<compile_context>
chip_gen: v7x
topology: tpu7x:2x2x1
jax: 0.10.0
libtpu: 0.0.40
codegen_flags: <defaults>
</compile_context>

<pallas_src>
import jax
import jax.numpy as jnp
from jax.experimental import pallas as pl
from jax.experimental.pallas import tpu as pltpu

STATE_SIZE = 33
HIDDEN = 256
BN_EPS = 1e-5


def critic_kernel(x_ref, gamma_ref, beta_ref, w1_ref, b1_ref, w2_ref, b2_ref, o_ref):
    # One grid step == G full, independent minibatches.
    x = x_ref[...]                                             # (G, B, S) f32
    G, B, S = x_ref.shape

    # BatchNorm1d (training mode), per minibatch: stats over axis=1 (sublanes),
    # folded into a single fused scale/shift.
    mean = jnp.mean(x, axis=1, keepdims=True)                  # (G, 1, S)
    var = jnp.mean((x - mean) ** 2, axis=1, keepdims=True)     # biased variance
    scale = gamma_ref[...] * jax.lax.rsqrt(var + BN_EPS)       # (G, 1, S)
    shift = beta_ref[...] - mean * scale
    xn = x * scale + shift                                     # (G, B, S)

    # Flatten minibatches so the MXU sees G*B rows per pass (layout-free reshape:
    # lane dim unchanged, sublane dims merged).
    xf = xn.reshape(G * B, S)

    # Hidden layer: Linear + ReLU (MXU matmul, f32 accumulate; Mosaic pads K=33).
    h = jnp.dot(xf, w1_ref[...], preferred_element_type=jnp.float32) + b1_ref[...]
    h = jnp.maximum(h, 0.0)                                    # (G*B, HIDDEN)

    # Output head: VPU multiply + lane reduce with w2 as a (1, HIDDEN) row
    # (avoids an N=1 MXU matmul), stored lane-dense (batch along lanes).
    v = jnp.sum(h * w2_ref[...], axis=-1) + b2_ref[0]          # (G*B,)
    o_ref[...] = v[None, :].astype(o_ref.dtype)                # (1, G*B)


def _pick_group(num_minibatches, batch):
    """Largest divisor of num_minibatches targeting >=256 matmul rows per step
    (v6e/v7x MXU width) while keeping >=2 grid steps for the two v7x TCs."""
    target = max(1, 256 // max(batch, 1))
    if num_minibatches >= 2:
        target = min(target, num_minibatches // 2)
    g = max(1, min(target, num_minibatches))
    while num_minibatches % g:
        g -= 1
    return g


def critic_forward_batched(x, gamma, beta, w1, b1, w2_row, b2, *, group=None):
    """x: (M, B, STATE_SIZE) of M independent minibatches -> (M, B, 1)."""
    M, B, S = x.shape
    assert S == STATE_SIZE
    if group is None:
        group = _pick_group(M, B)
    assert M % group == 0, "minibatches must not be split across grid steps (BN stats)"
    Mg = M // group
    rows = group * B

    x4 = x.astype(jnp.float32).reshape(Mg, group, B, S)

    cost = pl.CostEstimate(
        flops=int(M * B * (2 * S * HIDDEN + 2 * HIDDEN + 6 * S)),
        transcendentals=int(M * S),  # one rsqrt per feature per minibatch
        bytes_accessed=int(4 * (M * B * S + M * B
                                + S * HIDDEN + 3 * HIDDEN + 2 * S + 1)),
    )

    out = pl.pallas_call(
        critic_kernel,
        out_shape=jax.ShapeDtypeStruct((Mg, 1, rows), jnp.float32),
        grid=(Mg,),
        in_specs=[
            pl.BlockSpec((None, group, B, S), lambda m: (m, 0, 0, 0)),  # x: streamed
            pl.BlockSpec((1, S), lambda m: (0, 0)),                     # gamma: resident
            pl.BlockSpec((1, S), lambda m: (0, 0)),                     # beta: resident
            pl.BlockSpec((S, HIDDEN), lambda m: (0, 0)),                # w1: resident
            pl.BlockSpec((1, HIDDEN), lambda m: (0, 0)),                # b1: resident
            pl.BlockSpec((1, HIDDEN), lambda m: (0, 0)),                # w2 row: resident
            pl.BlockSpec(memory_space=pltpu.MemorySpace.SMEM),          # b2 scalar
        ],
        out_specs=pl.BlockSpec((None, 1, rows), lambda m: (m, 0, 0)),
        compiler_params=pltpu.CompilerParams(
            dimension_semantics=("parallel",)),
        cost_estimate=cost,
    )(x4, gamma, beta, w1, b1, w2_row, b2)

    # Lane-dense (Mg, 1, G*B) rows -> (M, B, 1): pure reshape (m-major, then b).
    return out.reshape(M, B, 1)


def critic_forward(x, *kernel_params):
    """Module-equivalent interface: x (B, STATE_SIZE) -> (B, 1)."""
    return critic_forward_batched(x[None], *kernel_params, group=1)[0]


def init_params(key, state_size=STATE_SIZE, hidden=HIDDEN):
    """Torch-like parameters (weights stored as (in, out))."""
    k1, k2, k3, k4 = jax.random.split(key, 4)
    lim1 = 1.0 / jnp.sqrt(jnp.float32(state_size))
    lim2 = 1.0 / jnp.sqrt(jnp.float32(hidden))
    w1 = jax.random.uniform(k1, (state_size, hidden), jnp.float32, -lim1, lim1)
    b1 = jax.random.uniform(k2, (1, hidden), jnp.float32, -lim1, lim1)
    w2 = jax.random.uniform(k3, (hidden, 1), jnp.float32, -lim2, lim2)
    b2 = jax.random.uniform(k4, (1, 1), jnp.float32, -lim2, lim2)
    gamma = jnp.ones((1, state_size), jnp.float32)   # BatchNorm1d default affine
    beta = jnp.zeros((1, state_size), jnp.float32)
    return gamma, beta, w1, b1, w2, b2


def prepare_kernel_params(gamma, beta, w1, b1, w2, b2):
    """Repack torch-like params into the kernel layout (done once, no padding)."""
    w2_row = w2.reshape(1, HIDDEN)   # (HIDDEN, 1) -> (1, HIDDEN) row for lane reduce
    b2_s = b2.reshape(1)             # scalar for SMEM
    return gamma, beta, w1, b1, w2_row, b2_s


def reference_forward(x, gamma, beta, w1, b1, w2, b2):
    mean = jnp.mean(x, axis=0, keepdims=True)
    var = jnp.mean((x - mean) ** 2, axis=0, keepdims=True)
    xn = (x - mean) / jnp.sqrt(var + BN_EPS) * gamma + beta
    h = jnp.maximum(xn @ w1 + b1, 0.0)
    return h @ w2 + b2


if __name__ == "__main__":
    key = jax.random.PRNGKey(0)
    kx, kp = jax.random.split(key)

    # 32 independent minibatches of 8 states; G=16 => 2 grid steps,
    # 128 matmul rows per step and 128-lane (lane-dense) output stores.
    M, B, G = 32, 8, 16
    x_all = jax.random.normal(kx, (M, B, STATE_SIZE), jnp.float32)

    torch_params = init_params(kp)
    kernel_params = prepare_kernel_params(*torch_params)

    out = critic_forward_batched(x_all, *kernel_params, group=G)
    out = jax.block_until_ready(out)
    assert out.shape == (M, B, 1)

    ref = jnp.stack([reference_forward(x_all[m], *torch_params) for m in range(M)])
    assert jnp.allclose(out, ref, atol=1e-4, rtol=1e-4)

    # Module-equivalent single-minibatch call.
    out1 = jax.block_until_ready(critic_forward(x_all[0], *kernel_params))
    assert out1.shape == (B, 1)
    assert jnp.allclose(out1, ref[0], atol=1e-4, rtol=1e-4)

    print("KERNEL_OK")
</pallas_src>

<mosaic_0001>
module attributes {stable_mosaic.version = 11 : i64} {
  func.func @critic_kernel(%arg0: i32, %arg1: memref<1x16x8x33xf32, #tpu.memory_space<vmem>>, %arg2: memref<1x33xf32, #tpu.memory_space<vmem>>, %arg3: memref<1x33xf32, #tpu.memory_space<vmem>>, %arg4: memref<33x256xf32, #tpu.memory_space<vmem>>, %arg5: memref<1x256xf32, #tpu.memory_space<vmem>>, %arg6: memref<1x256xf32, #tpu.memory_space<vmem>>, %arg7: memref<1xf32, #tpu.memory_space<smem>>, %arg8: memref<1x1x128xf32, #tpu.memory_space<vmem>>) attributes {dimension_semantics = [#tpu.dimension_semantics<parallel>], iteration_bounds = array<i64: 2>, scalar_prefetch = 0 : i64, scratch_operands = 0 : i64, tpu.core_type = #tpu.core_type<tc>, window_params = [{transform_indices = @transform_0, window_bounds = array<i64: 1, 16, 8, 33>}, {pipeline_mode = #tpu.pipeline_mode<synchronous>, transform_indices = @transform_1, window_bounds = array<i64: 1, 33>}, {pipeline_mode = #tpu.pipeline_mode<synchronous>, transform_indices = @transform_2, window_bounds = array<i64: 1, 33>}, {pipeline_mode = #tpu.pipeline_mode<synchronous>, transform_indices = @transform_3, window_bounds = array<i64: 33, 256>}, {pipeline_mode = #tpu.pipeline_mode<synchronous>, transform_indices = @transform_4, window_bounds = array<i64: 1, 256>}, {pipeline_mode = #tpu.pipeline_mode<synchronous>, transform_indices = @transform_5, window_bounds = array<i64: 1, 256>}, {transform_indices = @transform_6, window_bounds = array<i64: 1>}, {transform_indices = @transform_7, window_bounds = array<i64: 1, 1, 128>}]} {
    %c0 = arith.constant 0 : index
    %c0_0 = arith.constant 0 : index
    %c0_1 = arith.constant 0 : index
    %c0_2 = arith.constant 0 : index
    %0 = vector.load %arg1[%c0, %c0_0, %c0_1, %c0_2] : memref<1x16x8x33xf32, #tpu.memory_space<vmem>>, vector<1x16x8x33xf32>
    %1 = vector.shape_cast %0 : vector<1x16x8x33xf32> to vector<16x8x33xf32>
    %cst = arith.constant dense<0.000000e+00> : vector<16x33xf32>
    %2 = vector.multi_reduction <add>, %1, %cst [1] : vector<16x8x33xf32> to vector<16x33xf32>
    %3 = vector.shape_cast %2 : vector<16x33xf32> to vector<16x1x33xf32>
    %cst_3 = arith.constant 8.000000e+00 : f32
    %4 = vector.broadcast %cst_3 : f32 to vector<16x1x33xf32>
    %5 = arith.divf %3, %4 : vector<16x1x33xf32>
    %6 = vector.broadcast %5 : vector<16x1x33xf32> to vector<16x8x33xf32>
    %7 = arith.subf %1, %6 : vector<16x8x33xf32>
    %8 = arith.mulf %7, %7 : vector<16x8x33xf32>
    %cst_4 = arith.constant dense<0.000000e+00> : vector<16x33xf32>
    %9 = vector.multi_reduction <add>, %8, %cst_4 [1] : vector<16x8x33xf32> to vector<16x33xf32>
    %10 = vector.shape_cast %9 : vector<16x33xf32> to vector<16x1x33xf32>
    %cst_5 = arith.constant 8.000000e+00 : f32
    %11 = vector.broadcast %cst_5 : f32 to vector<16x1x33xf32>
    %12 = arith.divf %10, %11 : vector<16x1x33xf32>
    %c0_6 = arith.constant 0 : index
    %c0_7 = arith.constant 0 : index
    %13 = vector.load %arg2[%c0_6, %c0_7] : memref<1x33xf32, #tpu.memory_space<vmem>>, vector<1x33xf32>
    %cst_8 = arith.constant 9.99999974E-6 : f32
    %14 = vector.broadcast %cst_8 : f32 to vector<16x1x33xf32>
    %15 = arith.addf %12, %14 : vector<16x1x33xf32>
    %16 = math.rsqrt %15 : vector<16x1x33xf32>
    %17 = vector.shape_cast %13 : vector<1x33xf32> to vector<1x1x33xf32>
    %18 = vector.broadcast %17 : vector<1x1x33xf32> to vector<16x1x33xf32>
    %19 = arith.mulf %18, %16 : vector<16x1x33xf32>
    %c0_9 = arith.constant 0 : index
    %c0_10 = arith.constant 0 : index
    %20 = vector.load %arg3[%c0_9, %c0_10] : memref<1x33xf32, #tpu.memory_space<vmem>>, vector<1x33xf32>
    %21 = arith.mulf %5, %19 : vector<16x1x33xf32>
    %22 = vector.shape_cast %20 : vector<1x33xf32> to vector<1x1x33xf32>
    %23 = vector.broadcast %22 : vector<1x1x33xf32> to vector<16x1x33xf32>
    %24 = arith.subf %23, %21 : vector<16x1x33xf32>
    %25 = vector.broadcast %19 : vector<16x1x33xf32> to vector<16x8x33xf32>
    %26 = arith.mulf %1, %25 : vector<16x8x33xf32>
    %27 = vector.broadcast %24 : vector<16x1x33xf32> to vector<16x8x33xf32>
    %28 = arith.addf %26, %27 : vector<16x8x33xf32>
    %29 = vector.shape_cast %28 : vector<16x8x33xf32> to vector<128x33xf32>
    %c0_11 = arith.constant 0 : index
    %c0_12 = arith.constant 0 : index
    %30 = vector.load %arg4[%c0_11, %c0_12] : memref<33x256xf32, #tpu.memory_space<vmem>>, vector<33x256xf32>
    %cst_13 = arith.constant dense<0.000000e+00> : vector<128x256xf32>
    %31 = tpu.matmul %29, %30, %cst_13 {dimension_numbers = #tpu.dot_dimension_numbers<[1], [0], [0], [1], [0, 0, 1, 1], [], []>} : vector<128x33xf32>, vector<33x256xf32>, vector<128x256xf32> -> vector<128x256xf32>
    %c0_14 = arith.constant 0 : index
    %c0_15 = arith.constant 0 : index
    %32 = vector.load %arg5[%c0_14, %c0_15] : memref<1x256xf32, #tpu.memory_space<vmem>>, vector<1x256xf32>
    %33 = vector.broadcast %32 : vector<1x256xf32> to vector<128x256xf32>
    %34 = arith.addf %31, %33 : vector<128x256xf32>
    %cst_16 = arith.constant 0.000000e+00 : f32
    %35 = vector.broadcast %cst_16 : f32 to vector<128x256xf32>
    %36 = arith.maximumf %34, %35 : vector<128x256xf32>
    %c0_17 = arith.constant 0 : index
    %c0_18 = arith.constant 0 : index
    %37 = vector.load %arg6[%c0_17, %c0_18] : memref<1x256xf32, #tpu.memory_space<vmem>>, vector<1x256xf32>
    %38 = vector.broadcast %37 : vector<1x256xf32> to vector<128x256xf32>
    %39 = arith.mulf %36, %38 : vector<128x256xf32>
    %cst_19 = arith.constant dense<0.000000e+00> : vector<128xf32>
    %40 = vector.multi_reduction <add>, %39, %cst_19 [1] : vector<128x256xf32> to vector<128xf32>
    %c0_20 = arith.constant 0 : index
    %41 = memref.load %arg7[%c0_20] : memref<1xf32, #tpu.memory_space<smem>>
    %42 = vector.broadcast %41 : f32 to vector<128xf32>
    %43 = arith.addf %40, %42 : vector<128xf32>
    %44 = vector.shape_cast %43 : vector<128xf32> to vector<1x128xf32>
    %c0_21 = arith.constant 0 : index
    %c0_22 = arith.constant 0 : index
    %c0_23 = arith.constant 0 : index
    %45 = vector.load %arg8[%c0_21, %c0_22, %c0_23] : memref<1x1x128xf32, #tpu.memory_space<vmem>>, vector<1x1x128xf32>
    %46 = vector.shape_cast %45 : vector<1x1x128xf32> to vector<1x128xf32>
    %47 = vector.shape_cast %44 : vector<1x128xf32> to vector<1x1x128xf32>
    tpu.vector_store %arg8[%c0_21, %c0_22, %c0_23], %47 {strides = array<i32>} : memref<1x1x128xf32, #tpu.memory_space<vmem>>, vector<1x1x128xf32>,
    return
  }
  func.func @transform_0(%arg0: i32) -> (i32, i32, i32, i32) {
    %c0_i32 = arith.constant 0 : i32
    %c0_i32_0 = arith.constant 0 : i32
    %c0_i32_1 = arith.constant 0 : i32
    %c0_i32_2 = arith.constant 0 : i32
    return %arg0, %c0_i32, %c0_i32_0, %c0_i32_1 : i32, i32, i32, i32
  }
  func.func @transform_1(%arg0: i32) -> (i32, i32) {
    %c0_i32 = arith.constant 0 : i32
    %c0_i32_0 = arith.constant 0 : i32
    %c0_i32_1 = arith.constant 0 : i32
    return %c0_i32, %c0_i32_0 : i32, i32
  }
  func.func @transform_2(%arg0: i32) -> (i32, i32) {
    %c0_i32 = arith.constant 0 : i32
    %c0_i32_0 = arith.constant 0 : i32
    %c0_i32_1 = arith.constant 0 : i32
    return %c0_i32, %c0_i32_0 : i32, i32
  }
  func.func @transform_3(%arg0: i32) -> (i32, i32) {
    %c0_i32 = arith.constant 0 : i32
    %c0_i32_0 = arith.constant 0 : i32
    %c0_i32_1 = arith.constant 0 : i32
    return %c0_i32, %c0_i32_0 : i32, i32
  }
  func.func @transform_4(%arg0: i32) -> (i32, i32) {
    %c0_i32 = arith.constant 0 : i32
    %c0_i32_0 = arith.constant 0 : i32
    %c0_i32_1 = arith.constant 0 : i32
    return %c0_i32, %c0_i32_0 : i32, i32
  }
  func.func @transform_5(%arg0: i32) -> (i32, i32) {
    %c0_i32 = arith.constant 0 : i32
    %c0_i32_0 = arith.constant 0 : i32
    %c0_i32_1 = arith.constant 0 : i32
    return %c0_i32, %c0_i32_0 : i32, i32
  }
  func.func @transform_6(%arg0: i32) -> i32 {
    %c0_i32 = arith.constant 0 : i32
    %c0_i32_0 = arith.constant 0 : i32
    return %c0_i32 : i32
  }
  func.func @transform_7(%arg0: i32) -> (i32, i32, i32) {
    %c0_i32 = arith.constant 0 : i32
    %c0_i32_0 = arith.constant 0 : i32
    %c0_i32_1 = arith.constant 0 : i32
    return %arg0, %c0_i32, %c0_i32_0 : i32, i32, i32
  }
}

</mosaic_0001>

<bundles_post_ra>
// kernel: tpu_custom_call.1
= control target key start
LH: loop header
LB: loop body
LE: loop exit
PB: predicated region body
PF: predicated region fallthrough
CT: control target
= control target key end

     0   :  { %s2534_s0 = inlined_call_operand.hbm [shape: f32[2,16,8,33], index: 0, kind: input, shape index: {}]   ;;  %s2535_s1 = inlined_call_operand.vmem [shape: f32[1,33], index: 1, kind: input, shape index: {}]   ;;  %s2536_s2 = inlined_call_operand.vmem [shape: f32[1,33], index: 2, kind: input, shape index: {}]   ;;  %s2537_s3 = inlined_call_operand.hbm [shape: f32[33,256], index: 3, kind: input, shape index: {}]   ;;  %s2538_s4 = inlined_call_operand.vmem [shape: f32[1,256], index: 4, kind: input, shape index: {}]   ;;  %s2539_s5 = inlined_call_operand.vmem [shape: f32[1,256], index: 5, kind: input, shape index: {}]   ;;  %s2540_s6 = inlined_call_operand.<no memory space> [shape: f32[1], index: 6, kind: input, shape index: {}]   ;;  %s2541_s7 = inlined_call_operand.hbm [shape: f32[2,1,128], index: 7, kind: output, shape index: {}]  }
   0x1   :  { %12 = sst [smem:[#allocation2]] %s2540_s6 }
   0x2   :  { %13 = vsyncpa [#allocation4], 0 }
   0x3   :  { %15 = vsyncpa [#allocation4 + $0x1], 0 }
   0x4   :  { %16 = vsyncpa [#allocation7], 0 }
   0x5   :  { %17 = vsyncpa [#allocation5], 0 }
   0x6   :  { %19 = vsyncpa [#allocation5 + $0x1], 0  ;;  %s1843_s26 = smov 0   ;;  %s1845_s27 = smov 0  }
   0x7   :  { %s1847_s28 = smov 0   ;;  %s1849_s29 = smov 0  }
   0x8 LB: > { %s1864_s6 = sadd.s32 4294967295, %s1790_s29   ;;  %s1522_s30 = sadd.s32 4294967294, %s1790_s29   ;;  %s1790_s29 = sphi %s1849_s29, %s2561_s29   ;;  %s1786_s28 = sphi %s1847_s28, %s2560_s28   ;;  %s1782_s27 = sphi %s1845_s27, %s2559_s27   ;;  %s1778_s26 = sphi %s1843_s26, %s2558_s26  }
   0x9   : > { %p45_p0 = scmp.ne.s32.totalorder %s1782_s27, %s1778_s26  ;;  %p2542_p1 = scmp.eq.s32.totalorder %s1864_s6, 0 }
   0xa   : > { %p201_p3 = scmp.eq.s32.totalorder %s1522_s30, 1  ;;  %p1523_p5 = scmp.ge.s32.totalorder %s1790_s29, 1 }
   0xb   : > { %p1873_p4 = por %p2542_p1, %p45_p0  ;;  %p208_p7 = scmp.lt.s32.totalorder %s1790_s29, 3 }
   0xc   : > { %p1878_p6 = por %p201_p3, %p45_p0  ;;  %s1792_s11 = smov [#allocation6]  }
   0xd   : > { %s2545_s8 = scalar_select %p1873_p4, 1, 0 }
   0xe   : > { %s2546_s9 = scalar_select %p1878_p6, 1, 0 }
   0xf   : > { %p1883_p8 = pnand %p1523_p5, %p208_p7  ;;  %s226_s12 = sshll.u32 %s1792_s11, 4  ;;  %s1887_s12 = int_to_ptr.vmem [resolvable:$true] %s226_s12 }
  0x10   : > { %s1899_s14 = sadd.s32 1, %s1790_s29   ;;  %s32_s15 = sadd.s32 1, %s1786_s28 }
  0x11   : > { %s2547_s10 = scalar_select %p1883_p8, 1, 0 }
  0x12   : > { %p1576_p9 = pneg %p1883_p8  ;;  %s29_s16 = ssub.s32 %s1790_s29, %s1899_s14 }
  0x13   : > { %s1662_s19 = scalar_lea.hbm %s2537_s3, 1280 }
  0x14   : > { %p1894_p11 = pnand %p1576_p9, %p2542_p1  ;;  %p1663_p12 = scmp.ne.s32.totalorder %s2537_s3, %s1662_s19 }
  0x15   : > { %p1669_p5 = scmp.lt.u32.totalorder %s1662_s19, %s2537_s3 }
  0x16   : > { %p1664_p13 = pneg %p1894_p11 }
  0x18   : > { %p1665_p0 = pnand %p1664_p13, %p1663_p12 }
  0x1a   : > { %p1666_p3 = pneg %p1665_p0 }
  0x1c   : > { %p1671_p7 = pnand %p1669_p5, %p1666_p3 }
  0x1e   : > { %1674 = shalt.err (!%p1671_p7)
}
  0x1f   : > { %s1675_s24 = scalar_lea.vmem %s1887_s12, 1280  ;;  %p1683_p2 = scmp.lt.s32.totalorder %s1887_s12, %s1887_s12 }
  0x20   : > { %p1676_p9 = scmp.ne.s32.totalorder %s1887_s12, %s1675_s24  ;;  %p1684_p6 = scmp.lt.s32.totalorder %s1675_s24, %s1675_s24 }
  0x22   : > { %p1678_p10 = pnand %p1676_p9, %p1664_p13  ;;  %p1685_p4 = por %p1684_p6, %p1683_p2 }
  0x24   : > { %p1679_p1 = pneg %p1678_p10 }
  0x26   : > { %p1686_p8 = pnand %p1685_p4, %p1679_p1 }
  0x28   : > { %1689 = shalt.err (!%p1686_p8)
}
  0x29   : > { %s1793_s25 = smov 256   ;;  %s1794_s30 = smov 16  }
  0x2a   : > { %1579 = dma.hbm_to_vmem [thread:$0]  (!%p1894_p11), %s2537_s3, 1280, %s1887_s12, [#allocation7], %s1793_s25, %s1793_s25, %s1794_s30  }
  0x2b   : > { %p30_p2 = scmp.eq.s32.totalorder %s29_s16, 0  ;;  %p39_p1 = scmp.ne.s32.totalorder %s1786_s28, %s1782_s27 }
  0x2c   : > { %p40_p4 = scmp.eq.s32.totalorder %s1790_s29, 0  ;;  %p1589_p6 = scmp.lt.s32.totalorder %s1790_s29, 2 }
  0x2d   : > { %s1930_s18 = scalar_select %p30_p2, %s1786_s28, %s32_s15  }
  0x2e   : > { %p41_p8 = por %p40_p4, %p39_p1  ;;  %p2549_p10 = scmp.eq.s32.totalorder %s1864_s6, 1 }
  0x2f   : > { %s249_s20 = sand.u32 1, %s1786_s28   ;;  %s1553_s21 = sshll.u32 %s1790_s29, 11 }
  0x30   : > { %p1934_p12 = por %p2549_p10, %p39_p1  ;;  %s1526_s22 = sshll.u32 %s249_s20, 7 }
  0x31   : > { %s1943_s24 = scalar_lea.hbm %s2534_s0, %s1553_s21  ;;  %s253_s12 = scalar_lea.vmem [#allocation3], %s1526_s22 }
  0x32   : > { %s260_s15 = sshll.u32 %s253_s12, 4  ;;  %p1945_p11 = pnand %p1589_p6, %p41_p8  ;;  %s1949_s15 = int_to_ptr.vmem [resolvable:$true] %s260_s15 }
  0x33   : > { %s1951_s25 = scalar_lea.sflag [#allocation4], %s249_s20  ;;  %s1690_s30 = scalar_lea.hbm %s1943_s24, 2048 }
  0x34   : > { %p1691_p13 = scmp.ne.s32.totalorder %s1943_s24, %s1690_s30  ;;  %p1692_p0 = pneg %p1945_p11 }
  0x35   : > { %s1695_s21 = scalar_lea.hbm %s2534_s0, 4096  ;;  %p1696_p7 = scmp.lt.u32.totalorder %s1943_s24, %s2534_s0 }
  0x36   : > { %p1693_p3 = pnand %p1692_p0, %p1691_p13  ;;  %p1697_p9 = scmp.lt.u32.totalorder %s1695_s21, %s1690_s30 }
  0x37   : > { %p1699_p1 = scmp.lt.u32.totalorder %s1690_s30, %s1943_s24 }
  0x38   : > { %p1694_p5 = pneg %p1693_p3  ;;  %p1698_p2 = por %p1697_p9, %p1696_p7 }
  0x3a   : > { %p1700_p4 = por %p1699_p1, %p1698_p2 }
  0x3c   : > { %p1701_p6 = pnand %p1700_p4, %p1694_p5 }
  0x3e   : > { %1704 = shalt.err (!%p1701_p6)
}
  0x3f   : > { %s1705_s20 = scalar_lea.vmem %s1949_s15, 2048  ;;  %s1795_s23 = smov [#allocation3]  }
  0x40   : > { %p1706_p8 = scmp.ne.s32.totalorder %s1949_s15, %s1705_s20  ;;  %s1710_s12 = sshll.u32 %s1795_s23, 4  ;;  %s1711_s12 = int_to_ptr.vmem [resolvable:$false] %s1710_s12 }
  0x41   : > { %s1712_s11 = scalar_lea.vmem %s1711_s12, 4096  ;;  %p1713_p3 = scmp.lt.s32.totalorder %s1949_s15, %s1711_s12 }
  0x42   : > { %p1708_p10 = pnand %p1706_p8, %p1692_p0  ;;  %p1714_p7 = scmp.lt.s32.totalorder %s1712_s11, %s1705_s20 }
  0x44   : > { %p1709_p13 = pneg %p1708_p10  ;;  %p1715_p9 = por %p1714_p7, %p1713_p3 }
  0x46   : > { %p1716_p2 = pnand %p1715_p9, %p1709_p13 }
  0x48   : > { %1719 = shalt.err (!%p1716_p2)
}
  0x49   : > { %s1796_s30 = smov 128   ;;  %s1797_s17 = smov 8  }
  0x4a   : > { %1583 = dma.hbm_to_vmem [thread:$0]  (!%p1945_p11), %s1943_s24, 2048, %s1949_s15, %s1951_s25, %s1796_s30, %s1796_s30, %s1797_s17  }
  0x4b   : > { %p2552_p0 = scmp.ne.s32.totalorder %s2547_s10, 0 }
  0x4c   : > { %s1982_s21 = sand.u32 (!%p2552_p0), 1, %s1782_s27   ;;  %p2553_p5 = scmp.ne.s32.totalorder (!%p2552_p0), %s2545_s8, 0 }
  0x4d   : > { %272 = sbr.rel (%p2552_p0) target bundleno = 605 (0x25d), region = 48  ;;  %s1530_s22 = sshll.u32 (!%p2552_p0), %s1982_s21, 7 }
  0x4e   : > { %s275_s13 = scalar_lea.sflag (!%p2552_p0), [#allocation4], %s1982_s21  ;;  %s1986_s20 = scalar_lea.vmem (!%p2552_p0), [#allocation3], %s1530_s22 }
  0x54   : > { %1765 = dma.done.wait (%p2553_p5), %s275_s13, 2048  }
  0x55   : > { %1767 = vsyncadd (%p2553_p5), %s275_s13, 4294965248  ;;  %p2554_p11 = scmp.eq.s32.totalorder %s1864_s6, 0 }
  0x57   : > { %1769 = dma.done.wait (%p2554_p11), [#allocation7], 1280   ;;  %p2555_p1 = pmov %p2554_p11 }
  0x58   : > { %v1798_v0 = vmov 0.0   ;;  %v716_v1 = vlaneseq  ;;  %v925_v2 = vld [vmem:[#allocation6 + $0x8] sm:$0xff]  ;;  %v927_v3 = vld [vmem:[#allocation6 + $0x18] sm:$0xff]  ;;  %v924_v4 = vld [vmem:[#allocation6] sm:$0xff]  ;;  %vm328_vm0 = vcmask 269312   ;;  %vm994_vm1 = vcmask 1040384  }
  0x59   : > { %1771 = vsyncadd (%p2555_p1), [#allocation7], 4294966016  ;;  %1065 = vmatprep.mubr.f32.mxu0 %v1798_v0  ;;  %1113 = vmatprep.mubr.f32.mxu1 %v1798_v0  ;;  %v1554_v6 = vpack.c.bf16 %v927_v3, %v925_v2  ;;  %v926_v7 = vld [vmem:[#allocation6 + $0x10] sm:$0xff]  ;;  %v929_v8 = vld [vmem:[#allocation6 + $0x28] sm:$0xff]  ;;  %s1286_s11 = sld [smem:[#allocation2]]  ;;  %vm1331_vm2 = vcmask 130112  }
  0x5a   : > { %v1999_v5 = vshrl.u32 %v716_v1, 7  ;;  %v931_v9 = vld [vmem:[#allocation6 + $0x38] sm:$0xff]  ;;  %v1556_v10 = vpack.c.bf16 %v926_v7, %v924_v4  ;;  %v928_v12 = vld [vmem:[#allocation6 + $0x20] sm:$0xff]  ;;  %v930_v13 = vld [vmem:[#allocation6 + $0x30] sm:$0xff]  ;;  %vm1338_vm3 = vcmask 195712   ;;  %vm1345_vm4 = vcmask 261312  }
  0x5b   : > { %v1558_v11 = vpack.c.bf16 %v931_v9, %v929_v8  ;;  %1555 = vmatprep.subr.bf16.mxu0 %v1554_v6  ;;  %1562 = vmatprep.subr.bf16.mxu1 %v1554_v6  ;;  %v2002_v14 = vld [vmem:[%s1986_s20] sm:$0xff]  ;;  %v1560_v15 = vpack.c.bf16 %v930_v13, %v928_v12  ;;  %v933_v16 = vld [vmem:[#allocation6 + $0x48] sm:$0x1]  ;;  %v2023_v25 = vld [vmem:[%s1986_s20 + $0x10] sm:$0xff]  ;;  %vm1352_vm5 = vcmask 326912   ;;  %vm1359_vm6 = vcmask 392512  }
  0x5c   : > { %1557 = vmatpush1.bf16.msra.mxu0 %v1556_v10  ;;  %1565 = vmatpush1.bf16.msra.mxu1 %v1556_v10  ;;  %v329_v17 = vsel %vm328_vm0, %v2002_v14, 0.0  ;;  %v2007_v18 = vsub.s32 0, %v1999_v5  ;;  %v2010_v19 = vld [vmem:[%s1986_s20 + $0x40] sm:$0xff]  ;;  %v2013_v20 = vld [vmem:[%s1986_s20 + $0x8] sm:$0xff]  ;;  %v2026_v26 = vld [vmem:[%s1986_s20 + $0x18] sm:$0xff]  ;;  %v343_v30 = vsel %vm328_vm0, %v2023_v25, 0.0 }
  0x5d   : > { %1559 = vmatprep.subr.bf16.mxu0 %v1558_v11  ;;  %1563 = vmatprep.subr.bf16.mxu1 %v1558_v11  ;;  %v330_v21 = vrot.slane %v329_v17, 4  ;;  %v385_v22 = vsel %vm328_vm0, %v2010_v19, 0.0  ;;  %v336_v23 = vsel %vm328_vm0, %v2013_v20, 0.0  ;;  %v2020_v24 = vld [vmem:[%s1986_s20 + $0x48] sm:$0xff]  ;;  %v2033_v31 = vld [vmem:[%s1986_s20 + $0x50] sm:$0xff]  ;;  %v344_v34 = vrot.slane %v343_v30, 4 }
  0x5e   : > { %v386_v27 = vrot.slane %v385_v22, 4  ;;  %v337_v28 = vrot.slane %v336_v23, 4  ;;  %v392_v29 = vsel %vm328_vm0, %v2020_v24, 0.0  ;;  %v350_v35 = vsel %vm328_vm0, %v2026_v26, 0.0  ;;  %v2038_v36 = vld [vmem:[%s1986_s20 + $0x20] sm:$0xff]  ;;  %s1550_s30 = sshll.u32 %s1864_s6, 4 }
  0x5f   : > { %v331_v32 = vadd.f32 %v330_v21, %v329_v17  ;;  %v393_v33 = vrot.slane %v392_v29, 4  ;;  %v351_v39 = vrot.slane %v350_v35, 4  ;;  %v399_v40 = vsel %vm328_vm0, %v2033_v31, 0.0  ;;  %v932_v41 = vld [vmem:[#allocation6 + $0x40] sm:$0x1]  ;;  %s311_s17 = scalar_lea.vmem [#allocation8], %s1982_s21  ;;  %s2490_s8 = scalar_lea.hbm %s2541_s7, %s1550_s30 }
  0x60   : > { %1561 = vmatpush1.bf16.msra.mxu0 %v1560_v15  ;;  %1566 = vmatpush1.bf16.msra.mxu1 %v1560_v15  ;;  %v387_v37 = vadd.f32 %v386_v27, %v385_v22  ;;  %v338_v38 = vadd.f32 %v337_v28, %v336_v23  ;;  %v345_v44 = vadd.f32 %v344_v34, %v343_v30  ;;  %v400_v45 = vrot.slane %v399_v40, 4  ;;  %s1446_s22 = sshll.u32 %s311_s17, 4  ;;  %s1434_s10 = scalar_lea.sflag [#allocation5], %s1982_s21  ;;  %s2492_s22 = int_to_ptr.vmem [resolvable:$true] %s1446_s22 }
  0x61   : > { %1532 = vmatprep.subr.msk.mxu0 %vm994_vm1, %v933_v16  ;;  %1564 = vmatprep.subr.msk.mxu1 %vm994_vm1, %v933_v16  ;;  %v332_v42 = vrot.slane %v331_v32, 2  ;;  %v394_v43 = vadd.f32 %v393_v33, %v392_v29  ;;  %v352_v48 = vadd.f32 %v351_v39, %v350_v35  ;;  %v357_v49 = vsel %vm328_vm0, %v2038_v36, 0.0  ;;  %s1720_s24 = scalar_lea.vmem %s2492_s22, 16  ;;  %s1799_s6 = smov [#allocation8]  }
  0x62   : > { %v388_v46 = vrot.slane %v387_v37, 2  ;;  %v339_v47 = vrot.slane %v338_v38, 2  ;;  %v346_v52 = vrot.slane %v345_v44, 2  ;;  %v401_v53 = vadd.f32 %v400_v45, %v399_v40  ;;  %p1721_p4 = scmp.ne.s32.totalorder %s2492_s22, %s1720_s24  ;;  %s1724_s15 = sshll.u32 %s1799_s6, 4  ;;  %s1725_s15 = int_to_ptr.vmem [resolvable:$false] %s1724_s15 }
  0x63   : > { %v333_v50 = vadd.f32 %v332_v42, %v331_v32  ;;  %v395_v51 = vrot.slane %v394_v43, 2  ;;  %v353_v56 = vrot.slane %v352_v48, 2  ;;  %v358_v57 = vrot.slane %v357_v49, 4  ;;  %s1726_s16 = scalar_lea.vmem %s1725_s15, 32  ;;  %p1727_p10 = scmp.lt.s32.totalorder %s2492_s22, %s1725_s15 }
  0x64   : > { %1533 = vmatpush1.msk.msra.mxu0 %vm994_vm1, %v932_v41  ;;  %1567 = vmatpush1.msk.msra.mxu1 %vm994_vm1, %v932_v41  ;;  %v389_v54 = vadd.f32 %v388_v46, %v387_v37  ;;  %v340_v55 = vadd.f32 %v339_v47, %v338_v38  ;;  %v347_v60 = vadd.f32 %v346_v52, %v345_v44  ;;  %v402_v61 = vrot.slane %v401_v53, 2  ;;  %p1722_p6 = pnand %p1721_p4, %p1934_p12  ;;  %p1728_p13 = scmp.lt.s32.totalorder %s1726_s16, %s1720_s24 }
  0x65   : > { %v334_v58 = vrot.slane %v333_v50, 1  ;;  %v396_v59 = vadd.f32 %v395_v51, %v394_v43  ;;  %v354_v2 = vadd.f32 %v353_v56, %v352_v48  ;;  %v359_v3 = vadd.f32 %v358_v57, %v357_v49 }
  0x66   : > { %v390_v62 = vrot.slane %v389_v54, 1  ;;  %v341_v63 = vrot.slane %v340_v55, 1  ;;  %v348_v7 = vrot.slane %v347_v60, 1  ;;  %v403_v8 = vadd.f32 %v402_v61, %v401_v53  ;;  %p1723_p8 = pneg %p1722_p6  ;;  %p1729_p3 = por %p1728_p13, %p1727_p10 }
  0x67   : > { %v335_v4 = vadd.f32 %v334_v58, %v333_v50  ;;  %v397_v6 = vrot.slane %v396_v59, 1  ;;  %v355_v11 = vrot.slane %v354_v2, 1  ;;  %v360_v12 = vrot.slane %v359_v3, 2 }
  0x68   : > { %v391_v9 = vadd.f32 %v390_v62, %v389_v54  ;;  %v342_v10 = vadd.f32 %v341_v63, %v340_v55  ;;  %v349_v16 = vadd.f32 %v348_v7, %v347_v60  ;;  %v404_v17 = vrot.slane %v403_v8, 1  ;;  %p1730_p7 = pnand %p1729_p3, %p1723_p8 }
  0x69   : > { %v2048_v13 = vmul.f32 0.125, %v335_v4  ;;  %v398_v15 = vadd.f32 %v397_v6, %v396_v59  ;;  %v356_v23 = vadd.f32 %v355_v11, %v354_v2  ;;  %v361_v27 = vadd.f32 %v360_v12, %v359_v3 }
  0x6a   : > { %v2050_v21 = vmul.f32 0.125, %v391_v9  ;;  %v2052_v22 = vmul.f32 0.125, %v342_v10  ;;  %v2058_v30 = vmul.f32 0.125, %v349_v16  ;;  %v405_v32 = vadd.f32 %v404_v17, %v403_v8 }
  0x6b   : > { %v458_v28 = vsub.f32 %v2002_v14, %v2048_v13  ;;  %v2056_v29 = vmul.f32 0.125, %v398_v15  ;;  %v2064_v35 = vmul.f32 0.125, %v356_v23  ;;  %v362_v37 = vrot.slane %v361_v27, 1 }
  0x6c   : > { %v466_v33 = vsub.f32 %v2010_v19, %v2050_v21  ;;  %v459_v34 = vsub.f32 %v2013_v20, %v2052_v22  ;;  %v460_v40 = vsub.f32 %v2023_v25, %v2058_v30  ;;  %v2070_v41 = vmul.f32 0.125, %v405_v32 }
  0x6d   : > { %v474_v38 = vmul.f32 %v458_v28, %v458_v28  ;;  %v467_v39 = vsub.f32 %v2020_v24, %v2056_v29  ;;  %v461_v44 = vsub.f32 %v2026_v26, %v2064_v35  ;;  %v363_v45 = vadd.f32 %v362_v37, %v361_v27 }
  0x6e   : > { %v482_v42 = vmul.f32 %v466_v33, %v466_v33  ;;  %v475_v43 = vmul.f32 %v459_v34, %v459_v34  ;;  %v476_v48 = vmul.f32 %v460_v40, %v460_v40  ;;  %v468_v49 = vsub.f32 %v2033_v31, %v2070_v41 }
  0x6f   : > { %v490_v46 = vsel %vm328_vm0, %v474_v38, 0.0  ;;  %v483_v47 = vmul.f32 %v467_v39, %v467_v39  ;;  %v477_v53 = vmul.f32 %v461_v44, %v461_v44  ;;  %v2082_v8 = vmul.f32 0.125, %v363_v45 }
  0x70   : > { %v491_v50 = vrot.slane %v490_v46, 4  ;;  %v546_v51 = vsel %vm328_vm0, %v482_v42, 0.0  ;;  %v497_v52 = vsel %vm328_vm0, %v475_v43, 0.0  ;;  %v504_v57 = vsel %vm328_vm0, %v476_v48, 0.0 }
  0x71   : > { %v547_v54 = vrot.slane %v546_v51, 4  ;;  %v498_v55 = vrot.slane %v497_v52, 4  ;;  %v553_v56 = vsel %vm328_vm0, %v483_v47, 0.0  ;;  %v505_v60 = vrot.slane %v504_v57, 4 }
  0x72   : > { %v492_v58 = vadd.f32 %v491_v50, %v490_v46  ;;  %v554_v59 = vrot.slane %v553_v56, 4  ;;  %v511_v61 = vsel %vm328_vm0, %v477_v53, 0.0  ;;  %v484_v3 = vmul.f32 %v468_v49, %v468_v49 }
  0x73   : > { %v548_v62 = vadd.f32 %v547_v54, %v546_v51  ;;  %v499_v63 = vadd.f32 %v498_v55, %v497_v52  ;;  %v512_v2 = vrot.slane %v511_v61, 4  ;;  %v506_v7 = vadd.f32 %v505_v60, %v504_v57 }
  0x74   : > { %v493_v4 = vrot.slane %v492_v58, 2  ;;  %v555_v6 = vadd.f32 %v554_v59, %v553_v56  ;;  %v560_v12 = vsel %vm328_vm0, %v484_v3, 0.0  ;;  %v462_v33 = vsub.f32 %v2038_v36, %v2082_v8  ;;  %v2089_v3 = vld [vmem:[%s1986_s20 + $0x58] sm:$0xff] }
  0x75   : > { %v549_v9 = vrot.slane %v548_v62, 2  ;;  %v500_v10 = vrot.slane %v499_v63, 2  ;;  %v513_v11 = vadd.f32 %v512_v2, %v511_v61  ;;  %v507_v17 = vrot.slane %v506_v7, 2 }
  0x76   : > { %v494_v15 = vadd.f32 %v493_v4, %v492_v58  ;;  %v556_v16 = vrot.slane %v555_v6, 2  ;;  %v561_v23 = vrot.slane %v560_v12, 4  ;;  %v478_v44 = vmul.f32 %v462_v33, %v462_v33 }
  0x77   : > { %v550_v27 = vadd.f32 %v549_v9, %v548_v62  ;;  %v501_v28 = vadd.f32 %v500_v10, %v499_v63  ;;  %v514_v32 = vrot.slane %v513_v11, 2  ;;  %v508_v38 = vadd.f32 %v507_v17, %v506_v7  ;;  %v2092_v10 = vld [vmem:[%s1986_s20 + $0x28] sm:$0xff] }
  0x78   : > { %v495_v34 = vrot.slane %v494_v15, 1  ;;  %v557_v37 = vadd.f32 %v556_v16, %v555_v6  ;;  %v562_v39 = vadd.f32 %v561_v23, %v560_v12  ;;  %v518_v52 = vsel %vm328_vm0, %v478_v44, 0.0  ;;  %v2095_v16 = vld [vmem:[%s1986_s20 + $0x60] sm:$0xff]  ;;  %v2107_v44 = vld [vmem:[%s1986_s20 + $0x68] sm:$0xff] }
  0x79   : > { %v551_v40 = vrot.slane %v550_v27, 1  ;;  %v502_v42 = vrot.slane %v501_v28, 1  ;;  %v515_v43 = vadd.f32 %v514_v32, %v513_v11  ;;  %v509_v47 = vrot.slane %v508_v38, 1 }
  0x7a   : > { %v496_v45 = vadd.f32 %v495_v34, %v494_v15  ;;  %v558_v46 = vrot.slane %v557_v37, 1  ;;  %v563_v48 = vrot.slane %v562_v39, 2  ;;  %v519_v60 = vrot.slane %v518_v52, 4  ;;  %v2102_v34 = vld [vmem:[%s1986_s20 + $0x30] sm:$0xff] }
  0x7b   : > { %v552_v49 = vadd.f32 %v551_v40, %v550_v27  ;;  %v503_v50 = vadd.f32 %v502_v42, %v501_v28  ;;  %v516_v51 = vrot.slane %v515_v43, 1  ;;  %v510_v55 = vadd.f32 %v509_v47, %v508_v38 }
  0x7c   : > { %v602_v53 = vmul.f32 0.125, %v496_v45  ;;  %v559_v54 = vadd.f32 %v558_v46, %v557_v37  ;;  %v564_v56 = vadd.f32 %v563_v48, %v562_v39  ;;  %v520_v9 = vadd.f32 %v519_v60, %v518_v52  ;;  %v2110_v45 = vld [vmem:[%s1986_s20 + $0x38] sm:$0xff]  ;;  %v2115_v52 = vld [vmem:[%s1986_s20 + $0x70] sm:$0xff] }
  0x7d   : > { %v610_v57 = vmul.f32 0.125, %v552_v49  ;;  %v603_v58 = vmul.f32 0.125, %v503_v50  ;;  %v517_v59 = vadd.f32 %v516_v51, %v515_v43  ;;  %v604_v63 = vmul.f32 0.125, %v510_v55 }
  0x7e   : > { %v619_v61 = vadd.f32 1e-05, %v602_v53  ;;  %v611_v62 = vmul.f32 0.125, %v559_v54  ;;  %v565_v2 = vrot.slane %v564_v56, 1  ;;  %v521_v23 = vrot.slane %v520_v9, 2 }
  0x7f   : > { %v627_v4 = vadd.f32 1e-05, %v610_v57  ;;  %v620_v6 = vadd.f32 1e-05, %v603_v58  ;;  %v605_v7 = vmul.f32 0.125, %v517_v59  ;;  %v406_v27 = vsel %vm328_vm0, %v2089_v3, 0.0 }
  0x80   : > { %1630 = vrsqrt.f32 %v619_v61  ;;  %v628_v11 = vadd.f32 1e-05, %v611_v62  ;;  %v621_v12 = vadd.f32 1e-05, %v604_v63  ;;  %v566_v15 = vadd.f32 %v565_v2, %v564_v56  ;;  %v2124_v57 = vld [vmem:[%s2535_s1] sm:$0x1] }
  0x81   : > { %1632 = vrsqrt.f32 %v627_v4  ;;  %v622_v17 = vadd.f32 1e-05, %v605_v7  ;;  %v407_v32 = vrot.slane %v406_v27, 4  ;;  %v364_v33 = vsel %vm328_vm0, %v2092_v10, 0.0 }
  0x82   : > { %1634 = vrsqrt.f32 %v620_v6  ;;  %v612_v28 = vmul.f32 0.125, %v566_v15  ;;  %v522_v37 = vadd.f32 %v521_v23, %v520_v9  ;;  %v365_v38 = vrot.slane %v364_v33, 4 }
  0x83   : > { %1636 = vrsqrt.f32 %v628_v11  ;;  %v413_v39 = vsel %vm328_vm0, %v2095_v16, 0.0  ;;  %v408_v42 = vadd.f32 %v407_v32, %v406_v27  ;;  %v371_v48 = vsel %vm328_vm0, %v2102_v34, 0.0 }
  0x84   : > { %1638 = vrsqrt.f32 %v621_v12  ;;  %v629_v40 = vadd.f32 1e-05, %v612_v28  ;;  %v414_v43 = vrot.slane %v413_v39, 4  ;;  %v523_v46 = vrot.slane %v522_v37, 1 }
  0x85   : > { %1640 = vrsqrt.f32 %v622_v17  ;;  %v366_v47 = vadd.f32 %v365_v38, %v364_v33  ;;  %v409_v49 = vrot.slane %v408_v42, 2  ;;  %v372_v51 = vrot.slane %v371_v48, 4  ;;  %v2143_v33 = vld [vmem:[%s2536_s2] sm:$0x1] }
  0x86   : > { %1642 = vrsqrt.f32 %v629_v40  ;;  %v415_v50 = vadd.f32 %v414_v43, %v413_v39  ;;  %v524_v53 = vadd.f32 %v523_v46, %v522_v37  ;;  %v420_v55 = vsel %vm328_vm0, %v2107_v44, 0.0 }
  0x87   : > { %v367_v54 = vrot.slane %v366_v47, 2  ;;  %v378_v56 = vsel %vm328_vm0, %v2110_v45, 0.0  ;;  %v410_v58 = vadd.f32 %v409_v49, %v408_v42  ;;  %v373_v60 = vadd.f32 %v372_v51, %v371_v48 }
  0x88   : > { %v416_v59 = vrot.slane %v415_v50, 2  ;;  %v421_v61 = vrot.slane %v420_v55, 4  ;;  %v606_v62 = vmul.f32 0.125, %v524_v53  ;;  %v379_v2 = vrot.slane %v378_v56, 4 }
  0x89   : > { %v2126_v63 = vadd.f32 %v367_v54, %v366_v47  ;;  %v2130_v4 = vsel %vm328_vm0, %v2115_v52, 0.0  ;;  %v411_v7 = vrot.slane %v410_v58, 1  ;;  %v374_v11 = vrot.slane %v373_v60, 2 }
  0x8a   : > { %v1631_v6 = vpop.eup %1630  ;;  %v2132_v9 = vadd.f32 %v416_v59, %v415_v50  ;;  %v2134_v12 = vadd.f32 %v421_v61, %v420_v55  ;;  %v623_v23 = vadd.f32 1e-05, %v606_v62  ;;  %v2138_v28 = vadd.f32 %v379_v2, %v378_v56 }
  0x8b   : > { %v1633_v15 = vpop.eup %1632  ;;  %v651_v17 = vmul.f32 %v1631_v6, %v2124_v57  ;;  %v369_v27 = vrot.slane %v2126_v63, 1  ;;  %v412_v38 = vadd.f32 %v411_v7, %v410_v58  ;;  %v2147_v40 = vadd.f32 %v374_v11, %v373_v60 }
  0x8c   : > { %v1635_v32 = vpop.eup %1634  ;;  %v659_v37 = vmul.f32 %v1633_v15, %v2124_v57  ;;  %v418_v39 = vrot.slane %v2132_v9, 1  ;;  %1644 = vrsqrt.f32 %v623_v23  ;;  %vm1366_vm7 = vcmask 458112  }
  0x8d   : > { %v1637_v42 = vpop.eup %1636  ;;  %v668_v43 = vmul.f32 %v651_v17, %v2048_v13  ;;  %v719_v46 = vrot.slane %v651_v17, %v2007_v18  ;;  %v652_v47 = vmul.f32 %v1635_v32, %v2124_v57  ;;  %v2155_v53 = vmul.f32 0.125, %v412_v38 }
  0x8e   : > { %v1639_v48 = vpop.eup %1638  ;;  %v676_v49 = vmul.f32 %v659_v37, %v2050_v21  ;;  %v751_v50 = vrot.slane %v659_v37, %v2007_v18  ;;  %v660_v51 = vmul.f32 %v1637_v42, %v2124_v57  ;;  %vm1373_vm8 = vcmask 523712  }
  0x8f   : > { %v1641_v54 = vpop.eup %1640  ;;  %v684_v55 = vsub.f32 %v2143_v33, %v668_v43  ;;  %v796_v56 = vmul.f32 %v719_v46, %v2002_v14  ;;  %v669_v13 = vmul.f32 %v652_v47, %v2052_v22  ;;  %v723_v58 = vrot.slane %v652_v47, %v2007_v18 }
  0x90   : > { %v1643_v59 = vpop.eup %1642  ;;  %v692_v60 = vsub.f32 %v2143_v33, %v676_v49  ;;  %v804_v21 = vmul.f32 %v751_v50, %v2010_v19  ;;  %v677_v61 = vmul.f32 %v660_v51, %v2056_v29  ;;  %v755_v62 = vrot.slane %v660_v51, %v2007_v18 }
  0x91   : > { %v831_v2 = vrot.slane %v684_v55, %v2007_v18  ;;  %v685_v6 = vsub.f32 %v2143_v33, %v669_v13  ;;  %v797_v7 = vmul.f32 %v723_v58, %v2013_v20  ;;  %v653_v14 = vmul.f32 %v1639_v48, %v2124_v57 }
  0x92   : > { %v863_v22 = vrot.slane %v692_v60, %v2007_v18  ;;  %v693_v11 = vsub.f32 %v2143_v33, %v677_v61  ;;  %v805_v15 = vmul.f32 %v755_v62, %v2020_v24  ;;  %v654_v19 = vmul.f32 %v1641_v54, %v2124_v57 }
  0x93   : > { %v908_v17 = vadd.f32 %v831_v2, %v796_v56  ;;  %v835_v29 = vrot.slane %v685_v6, %v2007_v18  ;;  %v670_v23 = vmul.f32 %v653_v14, %v2058_v30  ;;  %v727_v32 = vrot.slane %v653_v14, %v2007_v18 }
  0x94   : > { %v916_v37 = vadd.f32 %v863_v22, %v804_v21  ;;  %v867_v20 = vrot.slane %v693_v11, %v2007_v18  ;;  %v671_v38 = vmul.f32 %v654_v19, %v2064_v35  ;;  %v731_v42 = vrot.slane %v654_v19, %v2007_v18 }
  0x95   : > { %1534 = vmatmul.mubr.msk.f32.vlgmr.msra.gmra.mrb[0].mxu0 %vm328_vm0, %v908_v17  ;;  %v909_v43 = vadd.f32 %v835_v29, %v797_v7  ;;  %v686_v24 = vsub.f32 %v2143_v33, %v670_v23  ;;  %v798_v46 = vmul.f32 %v727_v32, %v2023_v25  ;;  %v661_v47 = vmul.f32 %v1643_v59, %v2124_v57 }
  0x96   : > { %1542 = vmatmul.mubr.msk.f32.vlgmr.msra.gmra.mrb[0].mxu1 %vm328_vm0, %v916_v37  ;;  %1071 = vmatprep.mubr.f32.mxu0 %v1798_v0  ;;  %v917_v30 = vadd.f32 %v867_v20, %v805_v15  ;;  %v687_v48 = vsub.f32 %v2143_v33, %v671_v38  ;;  %v799_v35 = vmul.f32 %v731_v42, %v2026_v26  ;;  %v376_v49 = vrot.slane %v2147_v40, 1  ;;  %v1645_v50 = vpop.eup %1644 }
  0x97   : > { %1119 = vmatprep.mubr.f32.mxu1 %v1798_v0  ;;  %v839_v51 = vrot.slane %v686_v24, %v2007_v18  ;;  %v678_v25 = vmul.f32 %v661_v47, %v2070_v41  ;;  %v759_v54 = vrot.slane %v661_v47, %v2007_v18  ;;  %v469_v55 = vsub.f32 %v2089_v3, %v2155_v53 }
  0x98   : > { %v843_v56 = vrot.slane %v687_v48, %v2007_v18  ;;  %v655_v13 = vmul.f32 %v1645_v50, %v2124_v57  ;;  %v370_v26 = vadd.f32 %v369_v27, %v2126_v63  ;;  %v419_v58 = vadd.f32 %v418_v39, %v2132_v9 }
  0x99   : > { %1535 = vmatmul.mubr.msk.f32.gmra.mrb[2].mxu0 %vm328_vm0, %v909_v43  ;;  %v910_v59 = vadd.f32 %v839_v51, %v798_v46  ;;  %v694_v41 = vsub.f32 %v2143_v33, %v678_v25  ;;  %v806_v60 = vmul.f32 %v759_v54, %v2033_v31  ;;  %v485_v21 = vmul.f32 %v469_v55, %v469_v55  ;;  %v2237_v46 = vld [vmem:[%s1986_s20 + $0x78] sm:$0xff] }
  0x9a   : > { %1543 = vmatmul.mubr.msk.f32.gmra.mrb[2].mxu1 %vm328_vm0, %v917_v30  ;;  %1077 = vmatprep.mubr.f32.mxu0 %v1798_v0  ;;  %v911_v61 = vadd.f32 %v843_v56, %v799_v35  ;;  %v672_v62 = vmul.f32 %v655_v13, %v2082_v8  ;;  %v735_v2 = vrot.slane %v655_v13, %v2007_v18  ;;  %v2207_v63 = vmul.f32 0.125, %v370_v26 }
  0x9b   : > { %1125 = vmatprep.mubr.f32.mxu1 %v1798_v0  ;;  %v871_v9 = vrot.slane %v694_v41, %v2007_v18  ;;  %v567_v27 = vsel %vm328_vm0, %v485_v21, 0.0  ;;  %v2212_v39 = vmul.f32 0.125, %v419_v58  ;;  %v377_v31 = vadd.f32 %v376_v49, %v2147_v40 }
  0x9c   : > { %v688_v6 = vsub.f32 %v2143_v33, %v672_v62  ;;  %v800_v7 = vmul.f32 %v735_v2, %v2038_v36  ;;  %v568_v14 = vrot.slane %v567_v27, 4  ;;  %v463_v8 = vsub.f32 %v2092_v10, %v2207_v63 }
  0x9d   : > { %1536 = vmatmul.mubr.msk.f32.gmra.mrb[4].mxu0 %vm328_vm0, %v910_v59  ;;  %v918_v22 = vadd.f32 %v871_v9, %v806_v60  ;;  %v470_v11 = vsub.f32 %v2095_v16, %v2212_v39  ;;  %v2222_v15 = vmul.f32 0.125, %v377_v31  ;;  %v423_v19 = vrot.slane %v2134_v12, 2 }
  0x9e   : > { %1083 = vmatprep.mubr.f32.mxu0 %v1798_v0  ;;  %v847_v40 = vrot.slane %v688_v6, %v2007_v18  ;;  %v569_v36 = vadd.f32 %v568_v14, %v567_v27  ;;  %v479_v17 = vmul.f32 %v463_v8, %v463_v8  ;;  %v381_v29 = vrot.slane %v2138_v28, 2 }
  0x9f   : > { %1544 = vmatmul.mubr.msk.f32.gmra.mrb[4].mxu1 %vm328_vm0, %v918_v22  ;;  %v486_v23 = vmul.f32 %v470_v11, %v470_v11  ;;  %v464_v32 = vsub.f32 %v2102_v34, %v2222_v15  ;;  %v424_v37 = vadd.f32 %v423_v19, %v2134_v12  ;;  %v428_v20 = vrot.slane %v2130_v4, 4 }
  0xa0   : > { %1131 = vmatprep.mubr.f32.mxu1 %v1798_v0  ;;  %v912_v38 = vadd.f32 %v847_v40, %v800_v7  ;;  %v570_v42 = vrot.slane %v569_v36, 2  ;;  %v525_v43 = vsel %vm328_vm0, %v479_v17, 0.0  ;;  %v382_v24 = vadd.f32 %v381_v29, %v2138_v28 }
  0xa1   : > { %1537 = vmatmul.mubr.msk.f32.gmra.mrb[6].mxu0 %vm328_vm0, %v911_v61  ;;  %v526_v47 = vrot.slane %v525_v43, 4  ;;  %v574_v30 = vsel %vm328_vm0, %v486_v23, 0.0  ;;  %v480_v48 = vmul.f32 %v464_v32, %v464_v32  ;;  %v425_v35 = vrot.slane %v424_v37, 1 }
  0xa2   : > { %1089 = vmatprep.mubr.f32.mxu0 %v1798_v0  ;;  %v571_v12 = vadd.f32 %v570_v42, %v569_v36  ;;  %v575_v49 = vrot.slane %v574_v30, 4  ;;  %v383_v50 = vrot.slane %v382_v24, 1  ;;  %v429_v51 = vadd.f32 %v428_v20, %v2130_v4 }
  0xa3   : > { %v527_v25 = vadd.f32 %v526_v47, %v525_v43  ;;  %v532_v54 = vsel %vm328_vm0, %v480_v48, 0.0  ;;  %v426_v28 = vadd.f32 %v425_v35, %v424_v37  ;;  %v434_v55 = vsel %vm328_vm0, %v2237_v46, 0.0 }
  0xa4   : > { %v572_v56 = vrot.slane %v571_v12, 1  ;;  %v576_v13 = vadd.f32 %v575_v49, %v574_v30  ;;  %v533_v26 = vrot.slane %v532_v54, 4  ;;  %v384_v58 = vadd.f32 %v383_v50, %v382_v24 }
  0xa5   : > { %1538 = vmatmul.mubr.msk.f32.gmra.mrb[8].mxu0 %vm328_vm0, %v912_v38  ;;  %v528_v59 = vrot.slane %v527_v25, 2  ;;  %v2247_v41 = vmul.f32 0.125, %v426_v28  ;;  %v430_v60 = vrot.slane %v429_v51, 2  ;;  %v435_v21 = vrot.slane %v434_v55, 4 }
  0xa6   : > { %v573_v61 = vadd.f32 %v572_v56, %v571_v12  ;;  %1095 = vmatprep.mubr.f32.mxu0 %v1798_v0  ;;  %v577_v4 = vrot.slane %v576_v13, 2  ;;  %v534_v62 = vadd.f32 %v533_v26, %v532_v54  ;;  %v2250_v2 = vmul.f32 0.125, %v384_v58 }
  0xa7   : > { %v529_v9 = vadd.f32 %v528_v59, %v527_v25  ;;  %v471_v27 = vsub.f32 %v2107_v44, %v2247_v41  ;;  %v431_v31 = vadd.f32 %v430_v60, %v429_v51  ;;  %v436_v6 = vadd.f32 %v435_v21, %v434_v55 }
  0xa8   : > { %v613_v7 = vmul.f32 0.125, %v573_v61  ;;  %v578_v14 = vadd.f32 %v577_v4, %v576_v13  ;;  %v535_v8 = vrot.slane %v534_v62, 2  ;;  %v465_v22 = vsub.f32 %v2110_v45, %v2250_v2 }
  0xa9   : > { %v530_v11 = vrot.slane %v529_v9, 1  ;;  %v487_v19 = vmul.f32 %v471_v27, %v471_v27  ;;  %v432_v40 = vrot.slane %v431_v31, 1  ;;  %v437_v36 = vrot.slane %v436_v6, 2 }
  0xaa   : > { %v630_v17 = vadd.f32 1e-05, %v613_v7  ;;  %v579_v29 = vrot.slane %v578_v14, 1  ;;  %v536_v23 = vadd.f32 %v535_v8, %v534_v62  ;;  %v481_v32 = vmul.f32 %v465_v22, %v465_v22 }
  0xab   : > { %v531_v37 = vadd.f32 %v530_v11, %v529_v9  ;;  %v581_v20 = vsel %vm328_vm0, %v487_v19, 0.0  ;;  %v433_v38 = vadd.f32 %v432_v40, %v431_v31  ;;  %v438_v42 = vadd.f32 %v437_v36, %v436_v6 }
  0xac   : > { %1646 = vrsqrt.f32 %v630_v17  ;;  %v580_v43 = vadd.f32 %v579_v29, %v578_v14  ;;  %v537_v24 = vrot.slane %v536_v23, 1  ;;  %v582_v47 = vrot.slane %v581_v20, 4 }
  0xad   : > { %v607_v30 = vmul.f32 0.125, %v531_v37  ;;  %v539_v48 = vsel %vm328_vm0, %v481_v32, 0.0  ;;  %v2258_v35 = vmul.f32 0.125, %v433_v38  ;;  %v439_v12 = vrot.slane %v438_v42, 1 }
  0xae   : > { %v614_v49 = vmul.f32 0.125, %v580_v43  ;;  %v538_v50 = vadd.f32 %v537_v24, %v536_v23  ;;  %v583_v51 = vadd.f32 %v582_v47, %v581_v20  ;;  %v540_v25 = vrot.slane %v539_v48, 4 }
  0xaf   : > { %v624_v54 = vadd.f32 1e-05, %v607_v30  ;;  %v472_v28 = vsub.f32 %v2115_v52, %v2258_v35  ;;  %v440_v55 = vadd.f32 %v439_v12, %v438_v42  ;;  %vm1380_vm9 = vcmask 589312  }
  0xb0   : > { %v631_v56 = vadd.f32 1e-05, %v614_v49  ;;  %v608_v13 = vmul.f32 0.125, %v538_v50  ;;  %v584_v26 = vrot.slane %v583_v51, 2  ;;  %v541_v58 = vadd.f32 %v540_v25, %v539_v48 }
  0xb1   : > { %1648 = vrsqrt.f32 %v624_v54  ;;  %v488_v59 = vmul.f32 %v472_v28, %v472_v28  ;;  %v2262_v60 = vmul.f32 0.125, %v440_v55  ;;  %vm1387_vm10 = vcmask 654912  }
  0xb2   : > { %1650 = vrsqrt.f32 %v631_v56  ;;  %v625_v21 = vadd.f32 1e-05, %v608_v13  ;;  %v585_v61 = vadd.f32 %v584_v26, %v583_v51  ;;  %v542_v4 = vrot.slane %v541_v58, 2 }
  0xb3   : > { %v588_v62 = vsel %vm328_vm0, %v488_v59, 0.0  ;;  %v473_v9 = vsub.f32 %v2237_v46, %v2262_v60  ;;  %vm1394_vm11 = vcmask 720512   ;;  %vm1401_vm12 = vcmask 786112  }
  0xb4   : > { %1652 = vrsqrt.f32 %v625_v21  ;;  %v586_v27 = vrot.slane %v585_v61, 1  ;;  %v543_v31 = vadd.f32 %v542_v4, %v541_v58  ;;  %v589_v6 = vrot.slane %v588_v62, 4 }
  0xb5   : > { %v489_v7 = vmul.f32 %v473_v9, %v473_v9  ;;  %vm1408_vm13 = vcmask 851712   ;;  %vm1415_vm14 = vcmask 917312   ;;  %vm1422_vm15 = vcmask 982912  }
  0xb6   : > { %v1647_v14 = vpop.eup %1646  ;;  %v587_v8 = vadd.f32 %v586_v27, %v585_v61  ;;  %v544_v22 = vrot.slane %v543_v31, 1  ;;  %v590_v11 = vadd.f32 %v589_v6, %v588_v62 }
  0xb7   : > { %v662_v19 = vmul.f32 %v1647_v14, %v2124_v57  ;;  %v595_v40 = vsel %vm328_vm0, %v489_v7, 0.0 }
  0xb8   : > { %v615_v36 = vmul.f32 0.125, %v587_v8  ;;  %v545_v17 = vadd.f32 %v544_v22, %v543_v31  ;;  %v591_v29 = vrot.slane %v590_v11, 2  ;;  %v596_v23 = vrot.slane %v595_v40, 4 }
  0xb9   : > { %v679_v32 = vmul.f32 %v662_v19, %v2155_v53  ;;  %v763_v37 = vrot.slane %v662_v19, %v2007_v18 }
  0xba   : > { %v632_v20 = vadd.f32 1e-05, %v615_v36  ;;  %v609_v38 = vmul.f32 0.125, %v545_v17  ;;  %v592_v42 = vadd.f32 %v591_v29, %v590_v11  ;;  %v597_v43 = vadd.f32 %v596_v23, %v595_v40 }
  0xbb   : > { %v1649_v24 = vpop.eup %1648  ;;  %v695_v47 = vsub.f32 %v2143_v33, %v679_v32  ;;  %v807_v30 = vmul.f32 %v763_v37, %v2089_v3 }
  0xbc   : > { %v1651_v48 = vpop.eup %1650  ;;  %v656_v12 = vmul.f32 %v1649_v24, %v2124_v57  ;;  %1654 = vrsqrt.f32 %v632_v20  ;;  %v626_v49 = vadd.f32 1e-05, %v609_v38  ;;  %v593_v50 = vrot.slane %v592_v42, 1 }
  0xbd   : > { %v875_v51 = vrot.slane %v695_v47, %v2007_v18  ;;  %v663_v53 = vmul.f32 %v1651_v48, %v2124_v57  ;;  %v598_v25 = vrot.slane %v597_v43, 2 }
  0xbe   : > { %v1653_v54 = vpop.eup %1652  ;;  %v673_v28 = vmul.f32 %v656_v12, %v2207_v63  ;;  %v739_v55 = vrot.slane %v656_v12, %v2007_v18  ;;  %1656 = vrsqrt.f32 %v626_v49  ;;  %v594_v56 = vadd.f32 %v593_v50, %v592_v42 }
  0xbf   : > { %v919_v13 = vadd.f32 %v875_v51, %v807_v30  ;;  %v680_v3 = vmul.f32 %v663_v53, %v2212_v39  ;;  %v767_v26 = vrot.slane %v663_v53, %v2007_v18  ;;  %v657_v58 = vmul.f32 %v1653_v54, %v2124_v57 }
  0xc0   : > { %v689_v59 = vsub.f32 %v2143_v33, %v673_v28  ;;  %v801_v21 = vmul.f32 %v739_v55, %v2092_v10  ;;  %v616_v61 = vmul.f32 0.125, %v594_v56  ;;  %v599_v4 = vadd.f32 %v598_v25, %v597_v43 }
  0xc1   : > { %1545 = vmatmul.mubr.msk.f32.gmra.mrb[6].mxu1 %vm328_vm0, %v919_v13  ;;  %v696_v63 = vsub.f32 %v2143_v33, %v680_v3  ;;  %v808_v62 = vmul.f32 %v767_v26, %v2095_v16  ;;  %v674_v9 = vmul.f32 %v657_v58, %v2222_v15  ;;  %v743_v39 = vrot.slane %v657_v58, %v2007_v18 }
  0xc2   : > { %v851_v27 = vrot.slane %v689_v59, %v2007_v18  ;;  %1137 = vmatprep.mubr.f32.mxu1 %v1798_v0  ;;  %v633_v31 = vadd.f32 1e-05, %v616_v61  ;;  %v600_v6 = vrot.slane %v599_v4, 1 }
  0xc3   : > { %v879_v10 = vrot.slane %v696_v63, %v2007_v18  ;;  %v690_v7 = vsub.f32 %v2143_v33, %v674_v9  ;;  %v802_v14 = vmul.f32 %v743_v39, %v2102_v34 }
  0xc4   : > { %v913_v8 = vadd.f32 %v851_v27, %v801_v21  ;;  %1658 = vrsqrt.f32 %v633_v31  ;;  %v601_v22 = vadd.f32 %v600_v6, %v599_v4 }
  0xc5   : > { %v920_v16 = vadd.f32 %v879_v10, %v808_v62  ;;  %v855_v15 = vrot.slane %v690_v7, %v2007_v18 }
  0xc6   : > { %v1655_v11 = vpop.eup %1654  ;;  %1539 = vmatmul.mubr.msk.f32.gmra.mrb[10].mxu0 %vm328_vm0, %v913_v8  ;;  %v617_v19 = vmul.f32 0.125, %v601_v22 }
  0xc7   : > { %1101 = vmatprep.mubr.f32.mxu0 %v1798_v0  ;;  %1546 = vmatmul.mubr.msk.f32.gmra.mrb[8].mxu1 %vm328_vm0, %v920_v16  ;;  %v914_v40 = vadd.f32 %v855_v15, %v802_v14  ;;  %v664_v36 = vmul.f32 %v1655_v11, %v2124_v57 }
  0xc8   : > { %v1657_v17 = vpop.eup %1656  ;;  %1143 = vmatprep.mubr.f32.mxu1 %v1798_v0  ;;  %v634_v34 = vadd.f32 1e-05, %v617_v19 }
  0xc9   : > { %v681_v29 = vmul.f32 %v664_v36, %v2247_v41  ;;  %v771_v23 = vrot.slane %v664_v36, %v2007_v18  ;;  %v658_v32 = vmul.f32 %v1657_v17, %v2124_v57 }
  0xca   : > { %1540 = vmatmul.mubr.msk.f32.gmra.mrb[12].mxu0 %vm328_vm0, %v914_v40  ;;  %1660 = vrsqrt.f32 %v634_v34 }
  0xcb   : > { %1107 = vmatprep.mubr.f32.mxu0 %v1798_v0  ;;  %v697_v37 = vsub.f32 %v2143_v33, %v681_v29  ;;  %v809_v20 = vmul.f32 %v771_v23, %v2107_v44  ;;  %v675_v38 = vmul.f32 %v658_v32, %v2250_v2  ;;  %v747_v42 = vrot.slane %v658_v32, %v2007_v18 }
  0xcd   : > { %v883_v43 = vrot.slane %v697_v37, %v2007_v18  ;;  %v691_v41 = vsub.f32 %v2143_v33, %v675_v38  ;;  %v803_v24 = vmul.f32 %v747_v42, %v2110_v45 }
  0xce   : > { %v1659_v47 = vpop.eup %1658 }
  0xcf   : > { %v921_v30 = vadd.f32 %v883_v43, %v809_v20  ;;  %v859_v48 = vrot.slane %v691_v41, %v2007_v18  ;;  %v665_v12 = vmul.f32 %v1659_v47, %v2124_v57 }
  0xd1   : > { %1547 = vmatmul.mubr.msk.f32.gmra.mrb[10].mxu1 %vm328_vm0, %v921_v30  ;;  %v915_v49 = vadd.f32 %v859_v48, %v803_v24  ;;  %v682_v44 = vmul.f32 %v665_v12, %v2258_v35  ;;  %v775_v2 = vrot.slane %v665_v12, %v2007_v18 }
  0xd2   : > { %1149 = vmatprep.mubr.f32.mxu1 %v1798_v0 }
  0xd3   : > { %1541 = vmatmul.mubr.msk.f32.gmra.mrb[14].mxu0 %vm328_vm0, %v915_v49  ;;  %v698_v50 = vsub.f32 %v2143_v33, %v682_v44  ;;  %v810_v45 = vmul.f32 %v775_v2, %v2115_v52 }
  0xd4   : > { %v1661_v51 = vpop.eup %1660 }
  0xd5   : > { %v887_v53 = vrot.slane %v698_v50, %v2007_v18  ;;  %v666_v25 = vmul.f32 %v1661_v51, %v2124_v57  ;;  %v934_v57 = vld [vmem:[%s2538_s4] sm:$0x3] }
  0xd6   : > { %v2335_v3 = vrot.slane %v934_v57, %v2007_v18 }
  0xd7   : > { %v922_v54 = vadd.f32 %v887_v53, %v810_v45  ;;  %v683_v28 = vmul.f32 %v666_v25, %v2262_v60  ;;  %v779_v35 = vrot.slane %v666_v25, %v2007_v18  ;;  %v942_v60 = vsub.s32 1, %v1999_v5 }
  0xd9   : > { %1548 = vmatmul.mubr.msk.f32.gmra.mrb[12].mxu1 %vm328_vm0, %v922_v54  ;;  %v699_v55 = vsub.f32 %v2143_v33, %v683_v28  ;;  %v811_v56 = vmul.f32 %v779_v35, %v2237_v46  ;;  %v2337_v26 = vrot.slane %v934_v57, %v942_v60 }
  0xda   : > { %1155 = vmatprep.mubr.f32.mxu1 %v1798_v0  ;;  %v1194_v0 = vld [vmem:[%s2539_s5] sm:$0x3] }
  0xdb   : > { %v891_v52 = vrot.slane %v699_v55, %v2007_v18  ;;  %v2344_v21 = vrot.slane %v1194_v0, %v2007_v18  ;;  %v2348_v62 = vrot.slane %v1194_v0, %v942_v60 }
  0xdd   : > { %v923_v13 = vadd.f32 %v891_v52, %v811_v56 }
  0xdf   : > { %1549 = vmatmul.mubr.msk.f32.gmra.mrb[14].mxu1 %vm328_vm0, %v923_v13  ;;  %vm1429_vm0 = vcmask 1048512  }
 0x168   : > { %v1067_v33 = vpop.f32.mrb[0].mxu0 }
 0x169   : > { %v1068_v46 = vadd.f32 %v1067_v33, %v2335_v3  ;;  %v1069_v58 = vpop.f32.mrb[1].mxu0  ;;  %v1115_v59 = vpop.f32.mrb[0].mxu1 }
 0x16a   : > { %v1070_v61 = vadd.f32 %v1069_v58, %v2337_v26  ;;  %v1116_v4 = vadd.f32 %v1115_v59, %v2335_v3  ;;  %v1117_v63 = vpop.f32.mrb[1].mxu1 }
 0x16b   : > { %v1162_v9 = vmax.f32 %v1068_v46, 0.0  ;;  %v1118_v39 = vadd.f32 %v1117_v63, %v2337_v26 }
 0x16c   : > { %v1163_v27 = vmax.f32 %v1070_v61, 0.0  ;;  %v1178_v31 = vmax.f32 %v1116_v4, 0.0  ;;  %v1073_v6 = vpop.f32.mrb[2].mxu0 }
 0x16d   : > { %v1179_v10 = vmax.f32 %v1118_v39, 0.0  ;;  %v1074_v7 = vadd.f32 %v1073_v6, %v2335_v3  ;;  %v1121_v14 = vpop.f32.mrb[2].mxu1  ;;  %v1075_v8 = vpop.f32.mrb[3].mxu0  ;;  %v1206_v18 = vmul.f32 %v2344_v21, %v1162_v9 }
 0x16e   : > { %v1222_v22 = vmul.f32 %v2344_v21, %v1178_v31  ;;  %v1122_v16 = vadd.f32 %v1121_v14, %v2335_v3  ;;  %v1076_v15 = vadd.f32 %v1075_v8, %v2337_v26  ;;  %v1123_v11 = vpop.f32.mrb[3].mxu1  ;;  %v1207_v19 = vmul.f32 %v2348_v62, %v1163_v27 }
 0x16f   : > { %v1223_v40 = vmul.f32 %v2348_v62, %v1179_v10  ;;  %v1164_v36 = vmax.f32 %v1074_v7, 0.0  ;;  %v1124_v17 = vadd.f32 %v1123_v11, %v2337_v26 }
 0x170   : > { %v1180_v34 = vmax.f32 %v1122_v16, 0.0  ;;  %v1165_v29 = vmax.f32 %v1076_v15, 0.0  ;;  %v1079_v23 = vpop.f32.mrb[4].mxu0  ;;  %v1238_v32 = vadd.f32 %v1207_v19, %v1206_v18 }
 0x171   : > { %v1208_v37 = vmul.f32 %v2344_v21, %v1164_v36  ;;  %v1181_v20 = vmax.f32 %v1124_v17, 0.0  ;;  %v1080_v38 = vadd.f32 %v1079_v23, %v2335_v3  ;;  %v1081_v42 = vpop.f32.mrb[5].mxu0  ;;  %v1262_v43 = vadd.f32 %v1223_v40, %v1222_v22 }
 0x172   : > { %v1209_v41 = vmul.f32 %v2348_v62, %v1165_v29  ;;  %v1082_v24 = vadd.f32 %v1081_v42, %v2337_v26  ;;  %1239 = vadd.xlane.f32.xlu0 %v1238_v32  ;;  %v1127_v47 = vpop.f32.mrb[4].mxu1  ;;  %v1224_v30 = vmul.f32 %v2344_v21, %v1180_v34 }
 0x173   : > { %v1166_v48 = vmax.f32 %v1080_v38, 0.0  ;;  %v1128_v12 = vadd.f32 %v1127_v47, %v2335_v3  ;;  %v1129_v49 = vpop.f32.mrb[5].mxu1  ;;  %v1225_v44 = vmul.f32 %v2348_v62, %v1181_v20 }
 0x174   : > { %v1167_v2 = vmax.f32 %v1082_v24, 0.0  ;;  %v1085_v50 = vpop.f32.mrb[6].mxu0  ;;  %v1130_v45 = vadd.f32 %v1129_v49, %v2337_v26  ;;  %v1241_v51 = vadd.f32 %v1209_v41, %v1208_v37 }
 0x175   : > { %v1210_v53 = vmul.f32 %v2344_v21, %v1166_v48  ;;  %v1086_v25 = vadd.f32 %v1085_v50, %v2335_v3  ;;  %v1182_v54 = vmax.f32 %v1128_v12, 0.0  ;;  %v1087_v28 = vpop.f32.mrb[7].mxu0  ;;  %v1265_v35 = vadd.f32 %v1225_v44, %v1224_v30 }
 0x176   : > { %v1211_v55 = vmul.f32 %v2348_v62, %v1167_v2  ;;  %v1088_v56 = vadd.f32 %v1087_v28, %v2337_v26  ;;  %v1183_v52 = vmax.f32 %v1130_v45, 0.0  ;;  %1263 = vadd.xlane.f32.xlu0 %v1262_v43 }
 0x177   : > { %v1168_v13 = vmax.f32 %v1086_v25, 0.0  ;;  %v1226_v57 = vmul.f32 %v2344_v21, %v1182_v54  ;;  %1266 = vadd.xlane.f32.xlu1 %v1265_v35 }
 0x178   : > { %v1169_v60 = vmax.f32 %v1088_v56, 0.0  ;;  %v1227_v0 = vmul.f32 %v2348_v62, %v1183_v52  ;;  %v1091_v33 = vpop.f32.mrb[8].mxu0  ;;  %v1244_v46 = vadd.f32 %v1211_v55, %v1210_v53 }
 0x179   : > { %v1212_v58 = vmul.f32 %v2344_v21, %v1168_v13  ;;  %v1092_v59 = vadd.f32 %v1091_v33, %v2335_v3  ;;  %v1093_v61 = vpop.f32.mrb[9].mxu0 }
 0x17a   : > { %v1213_v4 = vmul.f32 %v2348_v62, %v1169_v60  ;;  %v1094_v63 = vadd.f32 %v1093_v61, %v2337_v26  ;;  %1242 = vadd.xlane.f32.xlu0 %v1241_v51  ;;  %v1268_v9 = vadd.f32 %v1227_v0, %v1226_v57 }
 0x17b   : > { %v1170_v39 = vmax.f32 %v1092_v59, 0.0  ;;  %1245 = vadd.xlane.f32.xlu1 %v1244_v46 }
 0x17c   : > { %v1171_v27 = vmax.f32 %v1094_v63, 0.0  ;;  %v1247_v31 = vadd.f32 %v1213_v4, %v1212_v58 }
 0x17d   : > { %v1214_v6 = vmul.f32 %v2344_v21, %v1170_v39 }
 0x17e   : > { %v1215_v10 = vmul.f32 %v2348_v62, %v1171_v27  ;;  %1269 = vadd.xlane.f32.xlu0 %v1268_v9 }
 0x17f   : > { %1248 = vadd.xlane.f32.xlu1 %v1247_v31 }
 0x180   : > { %v1250_v7 = vadd.f32 %v1215_v10, %v1214_v6 }
 0x182   : > { %1251 = vadd.xlane.f32.xlu0 %v1250_v7 }
 0x194   : > { %v1133_v14 = vpop.f32.mrb[6].mxu1 }
 0x195   : > { %v1134_v8 = vadd.f32 %v1133_v14, %v2335_v3  ;;  %v1135_v18 = vpop.f32.mrb[7].mxu1 }
 0x196   : > { %v1136_v22 = vadd.f32 %v1135_v18, %v2337_v26 }
 0x197   : > { %v1184_v16 = vmax.f32 %v1134_v8, 0.0 }
 0x198   : > { %v1185_v15 = vmax.f32 %v1136_v22, 0.0 }
 0x199   : > { %v1228_v11 = vmul.f32 %v2344_v21, %v1184_v16  ;;  %v1097_v19 = vpop.f32.mrb[10].mxu0 }
 0x19a   : > { %v1229_v40 = vmul.f32 %v2348_v62, %v1185_v15  ;;  %v1098_v36 = vadd.f32 %v1097_v19, %v2335_v3  ;;  %v1099_v17 = vpop.f32.mrb[11].mxu0  ;;  %v1139_v34 = vpop.f32.mrb[8].mxu1 }
 0x19b   : > { %v1100_v29 = vadd.f32 %v1099_v17, %v2337_v26  ;;  %v1140_v23 = vadd.f32 %v1139_v34, %v2335_v3  ;;  %v1141_v32 = vpop.f32.mrb[9].mxu1 }
 0x19c   : > { %v1172_v37 = vmax.f32 %v1098_v36, 0.0  ;;  %v1142_v20 = vadd.f32 %v1141_v32, %v2337_v26  ;;  %v1271_v38 = vadd.f32 %v1229_v40, %v1228_v11 }
 0x19d   : > { %v1173_v42 = vmax.f32 %v1100_v29, 0.0  ;;  %v1186_v43 = vmax.f32 %v1140_v23, 0.0  ;;  %v1103_v41 = vpop.f32.mrb[12].mxu0 }
 0x19e   : > { %v1216_v24 = vmul.f32 %v2344_v21, %v1172_v37  ;;  %v1104_v47 = vadd.f32 %v1103_v41, %v2335_v3  ;;  %v1187_v30 = vmax.f32 %v1142_v20, 0.0  ;;  %v1105_v48 = vpop.f32.mrb[13].mxu0  ;;  %1272 = vadd.xlane.f32.xlu1 %v1271_v38 }
 0x19f   : > { %v1217_v12 = vmul.f32 %v2348_v62, %v1173_v42  ;;  %v1230_v49 = vmul.f32 %v2344_v21, %v1186_v43  ;;  %v1106_v44 = vadd.f32 %v1105_v48, %v2337_v26 }
 0x1a0   : > { %v1174_v2 = vmax.f32 %v1104_v47, 0.0  ;;  %v1231_v50 = vmul.f32 %v2348_v62, %v1187_v30  ;;  %v2425_v47 = vstv %s1286_s11 }
 0x1a1   : > { %v1175_v45 = vmax.f32 %v1106_v44, 0.0  ;;  %v1253_v51 = vadd.f32 %v1217_v12, %v1216_v24 }
 0x1a2   : > { %v1218_v53 = vmul.f32 %v2344_v21, %v1174_v2  ;;  %v1274_v25 = vadd.f32 %v1231_v50, %v1230_v49 }
 0x1a3   : > { %v1219_v54 = vmul.f32 %v2348_v62, %v1175_v45  ;;  %1254 = vadd.xlane.f32.xlu1 %v1253_v51 }
 0x1a4   : > { %v1145_v28 = vpop.f32.mrb[10].mxu1 }
 0x1a5   : > { %v1146_v35 = vadd.f32 %v1145_v28, %v2335_v3  ;;  %v1147_v55 = vpop.f32.mrb[11].mxu1  ;;  %v1256_v56 = vadd.f32 %v1219_v54, %v1218_v53 }
 0x1a6   : > { %v1109_v52 = vpop.f32.mrb[14].mxu0  ;;  %v1148_v13 = vadd.f32 %v1147_v55, %v2337_v26 }
 0x1a7   : > { %v1188_v57 = vmax.f32 %v1146_v35, 0.0  ;;  %v1110_v60 = vadd.f32 %v1109_v52, %v2335_v3  ;;  %v1111_v0 = vpop.f32.mrb[15].mxu0  ;;  %1257 = vadd.xlane.f32.xlu0 %v1256_v56 }
 0x1a8   : > { %v1189_v33 = vmax.f32 %v1148_v13, 0.0  ;;  %v1112_v46 = vadd.f32 %v1111_v0, %v2337_v26 }
 0x1a9   : > { %v1232_v58 = vmul.f32 %v2344_v21, %v1188_v57  ;;  %v1176_v59 = vmax.f32 %v1110_v60, 0.0 }
 0x1aa   : > { %v1233_v61 = vmul.f32 %v2348_v62, %v1189_v33  ;;  %v1177_v4 = vmax.f32 %v1112_v46, 0.0 }
 0x1ab   : > { %v1220_v63 = vmul.f32 %v2344_v21, %v1176_v59  ;;  %1275 = vadd.xlane.f32.xlu0 %v1274_v25 }
 0x1ac   : > { %v1221_v9 = vmul.f32 %v2348_v62, %v1177_v4  ;;  %v1151_v39 = vpop.f32.mrb[12].mxu1  ;;  %v1277_v27 = vadd.f32 %v1233_v61, %v1232_v58 }
 0x1ad   : > { %v1152_v31 = vadd.f32 %v1151_v39, %v2335_v3  ;;  %v1153_v6 = vpop.f32.mrb[13].mxu1 }
 0x1ae   : > { %v1154_v10 = vadd.f32 %v1153_v6, %v2337_v26  ;;  %v1259_v7 = vadd.f32 %v1221_v9, %v1220_v63 }
 0x1af   : > { %v1190_v14 = vmax.f32 %v1152_v31, 0.0 }
 0x1b0   : > { %v1191_v8 = vmax.f32 %v1154_v10, 0.0  ;;  %1260 = vadd.xlane.f32.xlu1 %v1259_v7 }
 0x1b1   : > { %v1234_v18 = vmul.f32 %v2344_v21, %v1190_v14 }
 0x1b2   : > { %v1235_v22 = vmul.f32 %v2348_v62, %v1191_v8  ;;  %v1157_v16 = vpop.f32.mrb[14].mxu1 }
 0x1b3   : > { %v1158_v15 = vadd.f32 %v1157_v16, %v2335_v3  ;;  %v1159_v11 = vpop.f32.mrb[15].mxu1 }
 0x1b4   : > { %v1160_v19 = vadd.f32 %v1159_v11, %v2337_v26  ;;  %1278 = vadd.xlane.f32.xlu1 %v1277_v27  ;;  %v1280_v40 = vadd.f32 %v1235_v22, %v1234_v18  ;;  %v2414_v26 = vand.u32 127, %v716_v1 }
 0x1b5   : > { %v1192_v36 = vmax.f32 %v1158_v15, 0.0 }
 0x1b6   : > { %v1193_v17 = vmax.f32 %v1160_v19, 0.0  ;;  %1281 = vadd.xlane.f32.xlu0 %v1280_v40  ;;  %v1326_v41 = vadd.s32 4294967288, %v2414_v26  ;;  %v1333_v30 = vadd.s32 4294967280, %v2414_v26  ;;  %v1340_v48 = vadd.s32 4294967272, %v2414_v26 }
 0x1b7   : > { %v1236_v34 = vmul.f32 %v2344_v21, %v1192_v36  ;;  %v2420_v21 = vadd.s32 4294967224, %v2414_v26  ;;  %v1324_v44 = vsub.s32 %v2414_v26, %v1999_v5  ;;  %v1347_v2 = vadd.s32 4294967264, %v2414_v26 }
 0x1b8   : > { %v1237_v29 = vmul.f32 %v2348_v62, %v1193_v17  ;;  %v2423_v62 = vadd.s32 4294967232, %v2414_v26  ;;  %v1329_v1 = vsub.s32 %v1326_v41, %v1999_v5  ;;  %v1354_v53 = vadd.s32 4294967256, %v2414_v26 }
 0x1b9   : > { %v1385_v45 = vsub.s32 %v2420_v21, %v1999_v5  ;;  %v1336_v25 = vsub.s32 %v1333_v30, %v1999_v5  ;;  %v1343_v28 = vsub.s32 %v1340_v48, %v1999_v5  ;;  %v1361_v55 = vadd.s32 4294967248, %v2414_v26 }
 0x1ba   : > { %v1283_v23 = vadd.f32 %v1237_v29, %v1236_v34  ;;  %v1378_v51 = vsub.s32 %v2423_v62, %v1999_v5  ;;  %v1389_v13 = vadd.s32 4294967216, %v2414_v26  ;;  %v1396_v57 = vadd.s32 4294967208, %v2414_v26 }
 0x1bb   : > { %v1350_v0 = vsub.s32 %v1347_v2, %v1999_v5  ;;  %v1357_v58 = vsub.s32 %v1354_v53, %v1999_v5  ;;  %v1368_v61 = vadd.s32 4294967240, %v2414_v26  ;;  %v1364_v63 = vsub.s32 %v1361_v55, %v1999_v5 }
 0x1bc   : > { %1284 = vadd.xlane.f32.xlu1 %v1283_v23  ;;  %v1392_v31 = vsub.s32 %v1389_v13, %v1999_v5  ;;  %v1399_v6 = vsub.s32 %v1396_v57, %v1999_v5  ;;  %v1403_v7 = vadd.s32 4294967200, %v2414_v26  ;;  %v1410_v17 = vadd.s32 4294967192, %v2414_v26 }
 0x1bd   : > { %v1371_v8 = vsub.s32 %v1368_v61, %v1999_v5  ;;  %v1424_v2 = vadd.s32 4294967176, %v2414_v26 }
 0x1be   : > { %v1406_v23 = vsub.s32 %v1403_v7, %v1999_v5  ;;  %v1413_v30 = vsub.s32 %v1410_v17, %v1999_v5 }
 0x1bf   : > { %v1427_v55 = vsub.s32 %v1424_v2, %v1999_v5 }
 0x1ff   : > { %v1240_v32 = vpop.xlane.xlu0 %1239 }
 0x200   : > { %v1288_v50 = vadd.f32 %v2425_v47, %v1240_v32 }
 0x202   : > { %v1325_v46 = vrot.slane %v1288_v50, %v1324_v44 }
 0x203   : > { %v1264_v20 = vpop.xlane.xlu0 %1263 }
 0x204   : > { %v2411_v37 = vpop.xlane.xlu1 %1266  ;;  %v1296_v18 = vadd.f32 %v2425_v47, %v1264_v20 }
 0x205   : > { %v1297_v19 = vadd.f32 %v2425_v47, %v2411_v37 }
 0x206   : > { %v1379_v37 = vrot.slane %v1296_v18, %v1378_v51 }
 0x207   : > { %v1243_v3 = vpop.xlane.xlu0 %1242  ;;  %v1386_v21 = vrot.slane %v1297_v19, %v1385_v45 }
 0x208   : > { %v1246_v38 = vpop.xlane.xlu1 %1245  ;;  %v1289_v12 = vadd.f32 %v2425_v47, %v1243_v3 }
 0x209   : > { %v1290_v54 = vadd.f32 %v2425_v47, %v1246_v38 }
 0x20a   : > { %v1330_v56 = vrot.slane %v1289_v12, %v1329_v1 }
 0x20b   : > { %v1270_v43 = vpop.xlane.xlu0 %1269  ;;  %v1337_v4 = vrot.slane %v1290_v54, %v1336_v25 }
 0x20c   : > { %v1249_v42 = vpop.xlane.xlu1 %1248  ;;  %v1332_v39 = vsel %vm1331_vm2, %v1330_v56, %v1325_v46  ;;  %v1298_v34 = vadd.f32 %v2425_v47, %v1270_v43  ;;  %v1417_v43 = vadd.s32 4294967184, %v2414_v26 }
 0x20d   : > { %v1291_v52 = vadd.f32 %v2425_v47, %v1249_v42  ;;  %v1339_v22 = vsel %vm1338_vm3, %v1337_v4, %v1332_v39 }
 0x20e   : > { %v1420_v51 = vsub.s32 %v1417_v43, %v1999_v5 }
 0x20f   : > { %v1252_v49 = vpop.xlane.xlu0 %1251  ;;  %v1344_v27 = vrot.slane %v1291_v52, %v1343_v28 }
 0x210   : > { %v1292_v33 = vadd.f32 %v2425_v47, %v1252_v49 }
 0x211   : > { %v1346_v40 = vsel %vm1345_vm4, %v1344_v27, %v1339_v22 }
 0x212   : > { %v1351_v10 = vrot.slane %v1292_v33, %v1350_v0 }
 0x214   : > { %v1353_v29 = vsel %vm1352_vm5, %v1351_v10, %v1346_v40 }
 0x22b   : > { %v2417_v24 = vpop.xlane.xlu1 %1272 }
 0x22c   : > { %v1299_v32 = vadd.f32 %v2425_v47, %v2417_v24  ;;  %v1393_v24 = vrot.slane %v1298_v34, %v1392_v31 }
 0x22e   : > { %v1400_v49 = vrot.slane %v1299_v32, %v1399_v6 }
 0x230   : > { %v1255_v35 = vpop.xlane.xlu1 %1254 }
 0x231   : > { %v1293_v59 = vadd.f32 %v2425_v47, %v1255_v35 }
 0x233   : > { %v1358_v14 = vrot.slane %v1293_v59, %v1357_v58 }
 0x234   : > { %v1258_v60 = vpop.xlane.xlu0 %1257 }
 0x235   : > { %v1294_v9 = vadd.f32 %v2425_v47, %v1258_v60  ;;  %v1360_v20 = vsel %vm1359_vm6, %v1358_v14, %v1353_v29 }
 0x237   : > { %v1365_v16 = vrot.slane %v1294_v9, %v1364_v63 }
 0x238   : > { %v1276_v11 = vpop.xlane.xlu0 %1275 }
 0x239   : > { %v1367_v3 = vsel %vm1366_vm7, %v1365_v16, %v1360_v20  ;;  %v1300_v42 = vadd.f32 %v2425_v47, %v1276_v11 }
 0x23b   : > { %v1407_v45 = vrot.slane %v1300_v42, %v1406_v23 }
 0x23d   : > { %v1261_v15 = vpop.xlane.xlu1 %1260 }
 0x23e   : > { %v1295_v36 = vadd.f32 %v2425_v47, %v1261_v15 }
 0x240   : > { %v1372_v38 = vrot.slane %v1295_v36, %v1371_v8 }
 0x241   : > { %v1279_v41 = vpop.xlane.xlu1 %1278 }
 0x242   : > { %v1374_v62 = vsel %vm1373_vm8, %v1372_v38, %v1367_v3  ;;  %v1301_v48 = vadd.f32 %v2425_v47, %v1279_v41 }
 0x243   : > { %v1381_v1 = vsel %vm1380_vm9, %v1379_v37, %v1374_v62  ;;  %v1282_v12 = vpop.xlane.xlu0 %1281 }
 0x244   : > { %v1388_v44 = vsel %vm1387_vm10, %v1386_v21, %v1381_v1  ;;  %v1302_v53 = vadd.f32 %v2425_v47, %v1282_v12  ;;  %v1414_v54 = vrot.slane %v1301_v48, %v1413_v30 }
 0x245   : > { %v1395_v50 = vsel %vm1394_vm11, %v1393_v24, %v1388_v44 }
 0x246   : > { %v1402_v25 = vsel %vm1401_vm12, %v1400_v49, %v1395_v50  ;;  %v1421_v56 = vrot.slane %v1302_v53, %v1420_v51 }
 0x247   : > { %v1409_v28 = vsel %vm1408_vm13, %v1407_v45, %v1402_v25 }
 0x248   : > { %v1416_v35 = vsel %vm1415_vm14, %v1414_v54, %v1409_v28 }
 0x249   : > { %v1285_v52 = vpop.xlane.xlu1 %1284  ;;  %v1423_v13 = vsel %vm1422_vm15, %v1421_v56, %v1416_v35 }
 0x24a   : > { %v1303_v26 = vadd.f32 %v2425_v47, %v1285_v52 }
 0x24c   : > { %v1428_v57 = vrot.slane %v1303_v26, %v1427_v55 }
 0x24e   : > { %v1430_v5 = vsel %vm1429_vm0, %v1428_v57, %v1423_v13 }
 0x24f   : > { %1432 = vst [vmem:[%s311_s17] sm:$0x1] %v1430_v5 }
 0x250   : > { %1733 = shalt.err (!%p1730_p7)
}
 0x251   : > { %s1734_s21 = scalar_lea.hbm %s2490_s8, 16  ;;  %s1738_s12 = scalar_lea.hbm %s2541_s7, 32 }
 0x252   : > { %p1735_p9 = scmp.ne.s32.totalorder %s2490_s8, %s1734_s21  ;;  %p1739_p5 = scmp.lt.u32.totalorder %s2490_s8, %s2541_s7 }
 0x253   : > { %p1740_p11 = scmp.lt.u32.totalorder %s1738_s12, %s1734_s21  ;;  %p1742_p4 = scmp.lt.u32.totalorder %s1734_s21, %s2490_s8 }
 0x254   : > { %p1736_p2 = pnand %p1735_p9, %p1934_p12 }
 0x255   : > { %p1741_p1 = por %p1740_p11, %p1739_p5 }
 0x256   : > { %p1737_p0 = pneg %p1736_p2 }
 0x257   : > { %p1743_p6 = por %p1742_p4, %p1741_p1 }
 0x259   : > { %p1744_p8 = pnand %p1743_p6, %p1737_p0 }
 0x25b   : > { %1747 = shalt.err (!%p1744_p8)
}
 0x25c   : > { %1574 = dma.vmem_to_hbm [thread:$0]  (%p1934_p12), %s2492_s22, 16, %s2490_s8, %s1434_s10  }
 0x25d PF: > { %s1458_s17 = sand.u32 1, %s1778_s26   ;;  %p2556_p10 = scmp.ne.s32.totalorder %s2546_s9, 0 }
 0x25e   : > { %p2557_p13 = scmp.ge.s32.totalorder %s1790_s29, 2  ;;  %s1459_s13 = scalar_lea.sflag [#allocation5], %s1458_s17 }
 0x260   : > { %p1585_p3 = pnand %p2557_p13, %p2556_p10 }
 0x262   : > { %1773 = dma.done.wait (!%p1585_p3), %s1459_s13, 16  }
 0x263   : > { %1775 = vsyncadd (!%p1585_p3), %s1459_s13, 4294967280  ;;  %p22_p7 = scmp.ge.s32.totalorder %s1899_s14, 4   ;;  %s2558_s26 = smov %s1782_s27 }
 0x264   : > { %s2559_s27 = smov %s1786_s28  ;;  %s2560_s28 = smov %s1930_s18 }
 0x265   : > { %s2561_s29 = smov %s1899_s14  ;;  %24 = sbr.rel (!%p22_p7) target bundleno = 8 (0x8), region = 97 }
 0x26c   :  { %1463 = vsyncpa [#allocation4], 1 }
 0x26d   :  { %1465 = vsyncpa [#allocation4 + $0x1], 1 }
 0x26e   :  { %1466 = vsyncpa [#allocation7], 1 }
 0x26f   :  { %1467 = vsyncpa [#allocation5], 1 }
 0x270   :  { %1469 = vsyncpa [#allocation5 + $0x1], 1 }

</bundles_post_ra>
